<compile_context>
chip_gen: v7x
topology: tpu7x:2x2x1
jax: 0.10.0
libtpu: 0.0.40
codegen_flags: <defaults>
</compile_context>

<pallas_src>
import jax
import jax.numpy as jnp
from jax.experimental import pallas as pl
from jax.experimental.pallas import tpu as pltpu

_LANE_COLS = 1024            # lane-dense last dim: 8 sublanes * 128 lanes per f32 vreg
_MAX_BLOCK_ROWS = 512        # 512 x 1024 f32 = 2 MiB block; multiple of 32 -> legal for
                             # f32/bf16/int8 packed sublane tiling when not full-extent
_PALLAS_MIN_ELEMS = 262_144  # below this, the fused XLA mul-add path wins


def _round_up(x: int, m: int) -> int:
    return ((x + m - 1) // m) * m


def _linear_kernel(w_ref, b_ref, x_ref, o_ref):
    # w_ref, b_ref: (1,) f32 scalars in SMEM (scalar-unit loads, broadcast on VPU).
    # x_ref / o_ref: (block_rows, 1024) lane-dense tiles in VMEM.
    w = w_ref[0]
    b = b_ref[0]
    o_ref[...] = (x_ref[...].astype(jnp.float32) * w + b).astype(o_ref.dtype)


def linear_regression_v2(
    x: jax.Array,
    weight: jax.Array,
    bias: jax.Array,
    *,
    min_pallas_elems: int = _PALLAS_MIN_ELEMS,
) -> jax.Array:
    """x: (N, 1) float, weight: (1, 1) (PyTorch [out, in]), bias: (1,) -> (N, 1)."""
    n = x.shape[0]
    out_dtype = x.dtype
    w_s = weight.reshape(1).astype(jnp.float32)
    b_s = bias.reshape(1).astype(jnp.float32)

    # Small/medium batches: pallas_call launch + wrapper copies are pure overhead
    # for a mul-add stream; let XLA fuse it (and fuse into any consumer).
    if n < min_pallas_elems:
        y = x.astype(jnp.float32).reshape(-1) * w_s[0] + b_s[0]
        return y.astype(out_dtype).reshape(n, 1)

    # Lane-dense layout: flatten (N, 1) -> (rows, 1024). Pad only to the next
    # multiple of 1024 (<= 1023 elems); skip pad/slice entirely when divisible.
    flat = x.reshape(-1)
    total = _round_up(n, _LANE_COLS)
    padded = total != n
    if padded:
        flat = jnp.pad(flat, (0, total - n))
    rows = total // _LANE_COLS
    slab = flat.reshape(rows, _LANE_COLS)

    # Full-extent block when it fits (legal for any dtype), otherwise 512-row
    # blocks with a masked partial edge block (grid = cdiv, no block-multiple pad).
    block_rows = rows if rows <= _MAX_BLOCK_ROWS else _MAX_BLOCK_ROWS
    grid = (pl.cdiv(rows, block_rows),)

    out_slab = pl.pallas_call(
        _linear_kernel,
        out_shape=jax.ShapeDtypeStruct((rows, _LANE_COLS), out_dtype),
        grid_spec=pltpu.PrefetchScalarGridSpec(
            num_scalar_prefetch=0,
            grid=grid,
            in_specs=[
                pl.BlockSpec(memory_space=pltpu.MemorySpace.SMEM),   # weight scalar
                pl.BlockSpec(memory_space=pltpu.MemorySpace.SMEM),   # bias scalar
                pl.BlockSpec((block_rows, _LANE_COLS), lambda i: (i, 0)),
            ],
            out_specs=pl.BlockSpec((block_rows, _LANE_COLS), lambda i: (i, 0)),
        ),
        compiler_params=pltpu.CompilerParams(
            # HBM-bound stream: TC sharding is secondary, but harmless.
            dimension_semantics=("parallel",),
            # 2 MiB blocks * (in + out) * double-buffer = ~8 MiB; explicit 32 MiB
            # limit keeps v5e (16 MiB scoped default) happy and fits v7x/v6e.
            vmem_limit_bytes=32 * 1024 * 1024,
        ),
    )(w_s, b_s, slab)

    out_flat = out_slab.reshape(-1)
    if padded:
        out_flat = out_flat[:n]          # drop the <1024-element pad tail
    return out_flat.reshape(n, 1)


def _reference(x, weight, bias):
    # Exact nn.Linear(1, 1) math in f32 (elementwise, avoids MXU precision quirks).
    return (x.astype(jnp.float32) * weight[0, 0] + bias[0]).astype(x.dtype)


if __name__ == "__main__":
    key = jax.random.PRNGKey(0)
    kx0, kx1, kx2, kw, kb = jax.random.split(key, 5)

    # nn.Linear(1, 1) parameters: weight (out=1, in=1), bias (1,)
    weight = jax.random.uniform(kw, (1, 1), jnp.float32, minval=-1.0, maxval=1.0)
    bias = jax.random.uniform(kb, (1,), jnp.float32, minval=-1.0, maxval=1.0)

    # 1) Typical tiny batch for this module (N=8): XLA fallback path.
    x_small = jax.random.normal(kx0, (8, 1), jnp.float32)
    y_small = jax.block_until_ready(linear_regression_v2(x_small, weight, bias))
    assert y_small.shape == (8, 1)
    assert jnp.allclose(y_small, _reference(x_small, weight, bias), atol=1e-6, rtol=1e-6)

    # 2) Pallas path, ragged N (pads 32 elems, single full-extent 293-row block).
    n_ragged = 300_000
    x_ragged = jax.random.normal(kx1, (n_ragged, 1), jnp.float32)
    y_ragged = jax.block_until_ready(linear_regression_v2(x_ragged, weight, bias))
    assert y_ragged.shape == (n_ragged, 1)
    assert jnp.allclose(y_ragged, _reference(x_ragged, weight, bias), atol=1e-6, rtol=1e-6)

    # 3) Pallas path, multi-block grid with masked partial edge block
    #    (rows=700 -> blocks of 512 rows, grid=2, second block 188 valid rows).
    n_grid = 700 * _LANE_COLS
    x_grid = jax.random.normal(kx2, (n_grid, 1), jnp.float32)
    y_grid = jax.block_until_ready(linear_regression_v2(x_grid, weight, bias))
    assert y_grid.shape == (n_grid, 1)
    assert jnp.allclose(y_grid, _reference(x_grid, weight, bias), atol=1e-6, rtol=1e-6)

    print("KERNEL_OK")
</pallas_src>

<mosaic_0001>
module attributes {stable_mosaic.version = 11 : i64} {
  func.func @_linear_kernel(%arg0: i32, %arg1: memref<1xf32, #tpu.memory_space<smem>>, %arg2: memref<1xf32, #tpu.memory_space<smem>>, %arg3: memref<293x1024xf32, #tpu.memory_space<vmem>>, %arg4: memref<293x1024xf32, #tpu.memory_space<vmem>>) attributes {dimension_semantics = [#tpu.dimension_semantics<parallel>], iteration_bounds = array<i64: 1>, scalar_prefetch = 0 : i64, scratch_operands = 0 : i64, tpu.core_type = #tpu.core_type<tc>, window_params = [{transform_indices = @transform_0, window_bounds = array<i64: 1>}, {transform_indices = @transform_1, window_bounds = array<i64: 1>}, {transform_indices = @transform_2, window_bounds = array<i64: 293, 1024>}, {transform_indices = @transform_3, window_bounds = array<i64: 293, 1024>}]} {
    %c0 = arith.constant 0 : index
    %0 = memref.load %arg1[%c0] : memref<1xf32, #tpu.memory_space<smem>>
    %c0_0 = arith.constant 0 : index
    %1 = memref.load %arg2[%c0_0] : memref<1xf32, #tpu.memory_space<smem>>
    %c0_1 = arith.constant 0 : index
    %c0_2 = arith.constant 0 : index
    %2 = vector.load %arg3[%c0_1, %c0_2] : memref<293x1024xf32, #tpu.memory_space<vmem>>, vector<293x1024xf32>
    %3 = vector.broadcast %0 : f32 to vector<293x1024xf32>
    %4 = arith.mulf %2, %3 : vector<293x1024xf32>
    %5 = vector.broadcast %1 : f32 to vector<293x1024xf32>
    %6 = arith.addf %4, %5 : vector<293x1024xf32>
    %c0_3 = arith.constant 0 : index
    %c0_4 = arith.constant 0 : index
    %7 = vector.load %arg4[%c0_3, %c0_4] : memref<293x1024xf32, #tpu.memory_space<vmem>>, vector<293x1024xf32>
    tpu.vector_store %arg4[%c0_3, %c0_4], %6 {strides = array<i32>} : memref<293x1024xf32, #tpu.memory_space<vmem>>, vector<293x1024xf32>,
    return
  }
  func.func @transform_0(%arg0: i32) -> i32 {
    %c0_i32 = arith.constant 0 : i32
    %c0_i32_0 = arith.constant 0 : i32
    return %c0_i32 : i32
  }
  func.func @transform_1(%arg0: i32) -> i32 {
    %c0_i32 = arith.constant 0 : i32
    %c0_i32_0 = arith.constant 0 : i32
    return %c0_i32 : i32
  }
  func.func @transform_2(%arg0: i32) -> (i32, i32) {
    %c0_i32 = arith.constant 0 : i32
    %c0_i32_0 = arith.constant 0 : i32
    return %arg0, %c0_i32 : i32, i32
  }
  func.func @transform_3(%arg0: i32) -> (i32, i32) {
    %c0_i32 = arith.constant 0 : i32
    %c0_i32_0 = arith.constant 0 : i32
    return %arg0, %c0_i32 : i32, i32
  }
}

</mosaic_0001>

<bundles_post_ra>
// kernel: tpu_custom_call.1
= control target key start
LH: loop header
LB: loop body
LE: loop exit
PB: predicated region body
PF: predicated region fallthrough
CT: control target
= control target key end

     0   :  { %10 = vsyncpa [#allocation5], 0  ;;  %s1944_s0 = inlined_call_operand.<no memory space> [shape: f32[1], index: 0, kind: input, shape index: {}]   ;;  %s1945_s1 = inlined_call_operand.<no memory space> [shape: f32[1], index: 1, kind: input, shape index: {}]   ;;  %s1946_s2 = inlined_call_operand.hbm [shape: f32[293,1024], index: 2, kind: input, shape index: {}]   ;;  %s1947_s3 = inlined_call_operand.hbm [shape: f32[293,1024], index: 3, kind: output, shape index: {}]  }
   0x1   :  { %11 = vsyncpa [#allocation6], 0  ;;  %s1288_s12 = smov [#allocation4]   ;;  %s1240_s16 = scalar_lea.hbm %s1946_s2, 37888 }
   0x2   :  { %s21_s13 = sshll.u32 %s1288_s12, 4  ;;  %p1241_p0 = scmp.ne.s32.totalorder %s1946_s2, %s1240_s16  ;;  %s22_s13 = int_to_ptr.vmem [resolvable:$true] %s21_s13 }
   0x3   :  { %p1244_p1 = scmp.lt.u32.totalorder %s1240_s16, %s1946_s2 }
   0x5   :  { %p1246_p2 = pnand %p1244_p1, %p1241_p0 }
   0x7   :  { %1249 = shalt.err (!%p1246_p2)
}
   0x8   :  { %s1250_s21 = scalar_lea.vmem %s22_s13, 37888  ;;  %p1255_p4 = scmp.lt.s32.totalorder %s22_s13, %s22_s13 }
   0x9   :  { %p1251_p3 = scmp.ne.s32.totalorder %s22_s13, %s1250_s21  ;;  %p1256_p5 = scmp.lt.s32.totalorder %s1250_s21, %s1250_s21 }
   0xb   :  { %p1257_p6 = por %p1256_p5, %p1255_p4 }
   0xd   :  { %p1258_p7 = pnand %p1257_p6, %p1251_p3 }
   0xf   :  { %1261 = shalt.err (!%p1258_p7)
}
  0x10   :  { %s1289_s22 = smov 1024   ;;  %s1290_s23 = smov 64  }
  0x11   :  { %27 = dma.hbm_to_vmem [thread:$0]  %s1946_s2, 37888, %s22_s13, [#allocation5], %s1289_s22, %s1289_s22, %s1290_s23  }
  0x12   :  { %1284 = dma.done.wait [#allocation5], 37888  }
  0x13   :  { %1285 = vsyncadd [#allocation5], 4294929408  ;;  %v1330_v0 = vstv %s1944_s0  ;;  %v33_v1 = vld [vmem:[#allocation4] sm:$0xff]  ;;  %v1335_v2 = vstv %s1945_s1  ;;  %v34_v3 = vld [vmem:[#allocation4 + $0x8] sm:$0xff]  ;;  %s1291_s0 = smov [#allocation7]  }
  0x14   :  { %v35_v4 = vld [vmem:[#allocation4 + $0x10] sm:$0xff]  ;;  %v330_v5 = vmul.f32 %v1330_v0, %v33_v1  ;;  %v331_v6 = vmul.f32 %v1330_v0, %v34_v3  ;;  %v36_v8 = vld [vmem:[#allocation4 + $0x18] sm:$0xff]  ;;  %v37_v9 = vld [vmem:[#allocation4 + $0x20] sm:$0xff]  ;;  %s1224_s1 = sshll.u32 %s1291_s0, 4  ;;  %s1225_s1 = int_to_ptr.vmem [resolvable:$true] %s1224_s1 }
  0x15   :  { %v332_v7 = vmul.f32 %v1330_v0, %v35_v4  ;;  %v38_v10 = vld [vmem:[#allocation4 + $0x28] sm:$0xff]  ;;  %v333_v11 = vmul.f32 %v1330_v0, %v36_v8  ;;  %v334_v12 = vmul.f32 %v1330_v0, %v37_v9  ;;  %v39_v14 = vld [vmem:[#allocation4 + $0x30] sm:$0xff]  ;;  %v40_v15 = vld [vmem:[#allocation4 + $0x38] sm:$0xff]  ;;  %s1262_s2 = scalar_lea.vmem %s1225_s1, 37888  ;;  %p1267_p9 = scmp.lt.s32.totalorder %s1225_s1, %s1225_s1 }
  0x16   :  { %v335_v13 = vmul.f32 %v1330_v0, %v38_v10  ;;  %v41_v16 = vld [vmem:[#allocation4 + $0x40] sm:$0xff]  ;;  %v627_v17 = vadd.f32 %v1335_v2, %v330_v5  ;;  %v628_v18 = vadd.f32 %v1335_v2, %v331_v6  ;;  %v336_v20 = vmul.f32 %v1330_v0, %v39_v14  ;;  %v42_v21 = vld [vmem:[#allocation4 + $0x48] sm:$0xff]  ;;  %v43_v22 = vld [vmem:[#allocation4 + $0x50] sm:$0xff]  ;;  %p1263_p8 = scmp.ne.s32.totalorder %s1225_s1, %s1262_s2  ;;  %p1268_p10 = scmp.lt.s32.totalorder %s1262_s2, %s1262_s2 }
  0x17   :  { %v629_v19 = vadd.f32 %v1335_v2, %v332_v7  ;;  %v44_v23 = vld [vmem:[#allocation4 + $0x58] sm:$0xff]  ;;  %v630_v24 = vadd.f32 %v1335_v2, %v333_v11  ;;  %v631_v25 = vadd.f32 %v1335_v2, %v334_v12  ;;  %v337_v27 = vmul.f32 %v1330_v0, %v40_v15  ;;  %v45_v28 = vld [vmem:[#allocation4 + $0x60] sm:$0xff]  ;;  %v46_v29 = vld [vmem:[#allocation4 + $0x68] sm:$0xff] }
  0x18   :  { %v632_v26 = vadd.f32 %v1335_v2, %v335_v13  ;;  %v47_v30 = vld [vmem:[#allocation4 + $0x70] sm:$0xff]  ;;  %923 = vst [vmem:[#allocation7] sm:$0xff] %v627_v17  ;;  %924 = vst [vmem:[#allocation7 + $0x8] sm:$0xff] %v628_v18  ;;  %v633_v31 = vadd.f32 %v1335_v2, %v336_v20  ;;  %v338_v32 = vmul.f32 %v1330_v0, %v41_v16  ;;  %v48_v35 = vld [vmem:[#allocation4 + $0x78] sm:$0xff]  ;;  %p1269_p11 = por %p1268_p10, %p1267_p9 }
  0x19   :  { %925 = vst [vmem:[#allocation7 + $0x10] sm:$0xff] %v629_v19  ;;  %v339_v33 = vmul.f32 %v1330_v0, %v42_v21  ;;  %v340_v34 = vmul.f32 %v1330_v0, %v43_v22  ;;  %926 = vst [vmem:[#allocation7 + $0x18] sm:$0xff] %v630_v24  ;;  %v634_v36 = vadd.f32 %v1335_v2, %v337_v27  ;;  %v49_v40 = vld [vmem:[#allocation4 + $0x80] sm:$0xff]  ;;  %v50_v41 = vld [vmem:[#allocation4 + $0x88] sm:$0xff] }
  0x1a   :  { %927 = vst [vmem:[#allocation7 + $0x20] sm:$0xff] %v631_v25  ;;  %928 = vst [vmem:[#allocation7 + $0x28] sm:$0xff] %v632_v26  ;;  %v341_v37 = vmul.f32 %v1330_v0, %v44_v23  ;;  %v342_v38 = vmul.f32 %v1330_v0, %v45_v28  ;;  %v343_v39 = vmul.f32 %v1330_v0, %v46_v29  ;;  %v51_v42 = vld [vmem:[#allocation4 + $0x90] sm:$0xff]  ;;  %v52_v47 = vld [vmem:[#allocation4 + $0x98] sm:$0xff]  ;;  %p1270_p12 = pnand %p1269_p11, %p1263_p8 }
  0x1b   :  { %929 = vst [vmem:[#allocation7 + $0x30] sm:$0xff] %v633_v31  ;;  %v635_v43 = vadd.f32 %v1335_v2, %v338_v32  ;;  %v636_v44 = vadd.f32 %v1335_v2, %v339_v33  ;;  %v637_v45 = vadd.f32 %v1335_v2, %v340_v34  ;;  %v344_v46 = vmul.f32 %v1330_v0, %v47_v30  ;;  %v53_v48 = vld [vmem:[#allocation4 + $0xa0] sm:$0xff]  ;;  %v54_v49 = vld [vmem:[#allocation4 + $0xa8] sm:$0xff]  ;;  %v55_v54 = vld [vmem:[#allocation4 + $0xb0] sm:$0xff] }
  0x1c   :  { %930 = vst [vmem:[#allocation7 + $0x38] sm:$0xff] %v634_v36  ;;  %v638_v50 = vadd.f32 %v1335_v2, %v341_v37  ;;  %v639_v51 = vadd.f32 %v1335_v2, %v342_v38  ;;  %v640_v52 = vadd.f32 %v1335_v2, %v343_v39  ;;  %v345_v53 = vmul.f32 %v1330_v0, %v48_v35  ;;  %v56_v59 = vld [vmem:[#allocation4 + $0xb8] sm:$0xff]  ;;  %v57_v1 = vld [vmem:[#allocation4 + $0xc0] sm:$0xff]  ;;  %v58_v3 = vld [vmem:[#allocation4 + $0xc8] sm:$0xff] }
  0x1d   :  { %931 = vst [vmem:[#allocation7 + $0x40] sm:$0xff] %v635_v43  ;;  %932 = vst [vmem:[#allocation7 + $0x48] sm:$0xff] %v636_v44  ;;  %v641_v55 = vadd.f32 %v1335_v2, %v344_v46  ;;  %v346_v56 = vmul.f32 %v1330_v0, %v49_v40  ;;  %v347_v57 = vmul.f32 %v1330_v0, %v50_v41  ;;  %v59_v4 = vld [vmem:[#allocation4 + $0xd0] sm:$0xff]  ;;  %v60_v9 = vld [vmem:[#allocation4 + $0xd8] sm:$0xff] }
  0x1e   :  { %933 = vst [vmem:[#allocation7 + $0x50] sm:$0xff] %v637_v45  ;;  %v348_v58 = vmul.f32 %v1330_v0, %v51_v42  ;;  %934 = vst [vmem:[#allocation7 + $0x58] sm:$0xff] %v638_v50  ;;  %v642_v60 = vadd.f32 %v1335_v2, %v345_v53  ;;  %v349_v61 = vmul.f32 %v1330_v0, %v52_v47  ;;  %v61_v10 = vld [vmem:[#allocation4 + $0xe0] sm:$0xff]  ;;  %v62_v11 = vld [vmem:[#allocation4 + $0xe8] sm:$0xff] }
  0x1f   :  { %935 = vst [vmem:[#allocation7 + $0x60] sm:$0xff] %v639_v51  ;;  %936 = vst [vmem:[#allocation7 + $0x68] sm:$0xff] %v640_v52  ;;  %v350_v62 = vmul.f32 %v1330_v0, %v53_v48  ;;  %v351_v63 = vmul.f32 %v1330_v0, %v54_v49  ;;  %v643_v5 = vadd.f32 %v1335_v2, %v346_v56  ;;  %v63_v16 = vld [vmem:[#allocation4 + $0xf0] sm:$0xff]  ;;  %v64_v21 = vld [vmem:[#allocation4 + $0xf8] sm:$0xff] }
  0x20   :  { %937 = vst [vmem:[#allocation7 + $0x70] sm:$0xff] %v641_v55  ;;  %v644_v6 = vadd.f32 %v1335_v2, %v347_v57  ;;  %v645_v7 = vadd.f32 %v1335_v2, %v348_v58  ;;  %v352_v8 = vmul.f32 %v1330_v0, %v55_v54  ;;  %938 = vst [vmem:[#allocation7 + $0x78] sm:$0xff] %v642_v60  ;;  %v65_v26 = vld [vmem:[#allocation4 + $0x100] sm:$0xff]  ;;  %v66_v27 = vld [vmem:[#allocation4 + $0x108] sm:$0xff] }
  0x21   :  { %v646_v12 = vadd.f32 %v1335_v2, %v349_v61  ;;  %v647_v13 = vadd.f32 %v1335_v2, %v350_v62  ;;  %v648_v14 = vadd.f32 %v1335_v2, %v351_v63  ;;  %v353_v15 = vmul.f32 %v1330_v0, %v56_v59  ;;  %939 = vst [vmem:[#allocation7 + $0x80] sm:$0xff] %v643_v5  ;;  %v67_v28 = vld [vmem:[#allocation4 + $0x110] sm:$0xff]  ;;  %v68_v33 = vld [vmem:[#allocation4 + $0x118] sm:$0xff]  ;;  %v69_v34 = vld [vmem:[#allocation4 + $0x120] sm:$0xff] }
  0x22   :  { %940 = vst [vmem:[#allocation7 + $0x88] sm:$0xff] %v644_v6  ;;  %941 = vst [vmem:[#allocation7 + $0x90] sm:$0xff] %v645_v7  ;;  %v649_v17 = vadd.f32 %v1335_v2, %v352_v8  ;;  %v354_v18 = vmul.f32 %v1330_v0, %v57_v1  ;;  %v355_v19 = vmul.f32 %v1330_v0, %v58_v3  ;;  %v70_v35 = vld [vmem:[#allocation4 + $0x128] sm:$0xff]  ;;  %v71_v40 = vld [vmem:[#allocation4 + $0x130] sm:$0xff] }
  0x23   :  { %v356_v20 = vmul.f32 %v1330_v0, %v59_v4  ;;  %942 = vst [vmem:[#allocation7 + $0x98] sm:$0xff] %v646_v12  ;;  %943 = vst [vmem:[#allocation7 + $0xa0] sm:$0xff] %v647_v13  ;;  %v650_v22 = vadd.f32 %v1335_v2, %v353_v15  ;;  %v357_v23 = vmul.f32 %v1330_v0, %v60_v9  ;;  %v72_v45 = vld [vmem:[#allocation4 + $0x138] sm:$0xff]  ;;  %v73_v50 = vld [vmem:[#allocation4 + $0x140] sm:$0xff] }
  0x24   :  { %944 = vst [vmem:[#allocation7 + $0xa8] sm:$0xff] %v648_v14  ;;  %v358_v24 = vmul.f32 %v1330_v0, %v61_v10  ;;  %v359_v25 = vmul.f32 %v1330_v0, %v62_v11  ;;  %945 = vst [vmem:[#allocation7 + $0xb0] sm:$0xff] %v649_v17  ;;  %v651_v29 = vadd.f32 %v1335_v2, %v354_v18  ;;  %v74_v51 = vld [vmem:[#allocation4 + $0x148] sm:$0xff]  ;;  %v75_v52 = vld [vmem:[#allocation4 + $0x150] sm:$0xff] }
  0x25   :  { %v652_v30 = vadd.f32 %v1335_v2, %v355_v19  ;;  %v653_v31 = vadd.f32 %v1335_v2, %v356_v20  ;;  %v360_v32 = vmul.f32 %v1330_v0, %v63_v16  ;;  %946 = vst [vmem:[#allocation7 + $0xb8] sm:$0xff] %v650_v22  ;;  %v654_v36 = vadd.f32 %v1335_v2, %v357_v23  ;;  %v76_v57 = vld [vmem:[#allocation4 + $0x158] sm:$0xff]  ;;  %v77_v58 = vld [vmem:[#allocation4 + $0x160] sm:$0xff]  ;;  %v78_v59 = vld [vmem:[#allocation4 + $0x168] sm:$0xff] }
  0x26   :  { %v655_v37 = vadd.f32 %v1335_v2, %v358_v24  ;;  %v656_v38 = vadd.f32 %v1335_v2, %v359_v25  ;;  %v361_v39 = vmul.f32 %v1330_v0, %v64_v21  ;;  %947 = vst [vmem:[#allocation7 + $0xc0] sm:$0xff] %v651_v29  ;;  %v362_v42 = vmul.f32 %v1330_v0, %v65_v26  ;;  %v79_v1 = vld [vmem:[#allocation4 + $0x170] sm:$0xff]  ;;  %v80_v7 = vld [vmem:[#allocation4 + $0x178] sm:$0xff]  ;;  %v81_v12 = vld [vmem:[#allocation4 + $0x180] sm:$0xff] }
  0x27   :  { %948 = vst [vmem:[#allocation7 + $0xc8] sm:$0xff] %v652_v30  ;;  %949 = vst [vmem:[#allocation7 + $0xd0] sm:$0xff] %v653_v31  ;;  %v657_v41 = vadd.f32 %v1335_v2, %v360_v32  ;;  %v363_v43 = vmul.f32 %v1330_v0, %v66_v27  ;;  %v364_v44 = vmul.f32 %v1330_v0, %v67_v28  ;;  %v82_v13 = vld [vmem:[#allocation4 + $0x188] sm:$0xff]  ;;  %v83_v14 = vld [vmem:[#allocation4 + $0x190] sm:$0xff] }
  0x28   :  { %950 = vst [vmem:[#allocation7 + $0xd8] sm:$0xff] %v654_v36  ;;  %951 = vst [vmem:[#allocation7 + $0xe0] sm:$0xff] %v655_v37  ;;  %v658_v46 = vadd.f32 %v1335_v2, %v361_v39  ;;  %v365_v47 = vmul.f32 %v1330_v0, %v68_v33  ;;  %v366_v48 = vmul.f32 %v1330_v0, %v69_v34  ;;  %v84_v19 = vld [vmem:[#allocation4 + $0x198] sm:$0xff]  ;;  %v85_v20 = vld [vmem:[#allocation4 + $0x1a0] sm:$0xff] }
  0x29   :  { %952 = vst [vmem:[#allocation7 + $0xe8] sm:$0xff] %v656_v38  ;;  %v367_v49 = vmul.f32 %v1330_v0, %v70_v35  ;;  %953 = vst [vmem:[#allocation7 + $0xf0] sm:$0xff] %v657_v41  ;;  %v659_v53 = vadd.f32 %v1335_v2, %v362_v42  ;;  %v660_v54 = vadd.f32 %v1335_v2, %v363_v43  ;;  %v86_v21 = vld [vmem:[#allocation4 + $0x1a8] sm:$0xff]  ;;  %v87_v26 = vld [vmem:[#allocation4 + $0x1b0] sm:$0xff] }
  0x2a   :  { %v661_v55 = vadd.f32 %v1335_v2, %v364_v44  ;;  %v368_v56 = vmul.f32 %v1330_v0, %v71_v40  ;;  %954 = vst [vmem:[#allocation7 + $0xf8] sm:$0xff] %v658_v46  ;;  %v662_v60 = vadd.f32 %v1335_v2, %v365_v47  ;;  %v663_v61 = vadd.f32 %v1335_v2, %v366_v48  ;;  %v88_v31 = vld [vmem:[#allocation4 + $0x1b8] sm:$0xff]  ;;  %v89_v36 = vld [vmem:[#allocation4 + $0x1c0] sm:$0xff]  ;;  %v90_v37 = vld [vmem:[#allocation4 + $0x1c8] sm:$0xff] }
  0x2b   :  { %v664_v62 = vadd.f32 %v1335_v2, %v367_v49  ;;  %v369_v63 = vmul.f32 %v1330_v0, %v72_v45  ;;  %955 = vst [vmem:[#allocation7 + $0x100] sm:$0xff] %v659_v53  ;;  %956 = vst [vmem:[#allocation7 + $0x108] sm:$0xff] %v660_v54  ;;  %v370_v4 = vmul.f32 %v1330_v0, %v73_v50  ;;  %v91_v38 = vld [vmem:[#allocation4 + $0x1d0] sm:$0xff]  ;;  %v92_v43 = vld [vmem:[#allocation4 + $0x1d8] sm:$0xff] }
  0x2c   :  { %957 = vst [vmem:[#allocation7 + $0x110] sm:$0xff] %v661_v55  ;;  %v665_v3 = vadd.f32 %v1335_v2, %v368_v56  ;;  %v371_v5 = vmul.f32 %v1330_v0, %v74_v51  ;;  %v372_v6 = vmul.f32 %v1330_v0, %v75_v52  ;;  %958 = vst [vmem:[#allocation7 + $0x118] sm:$0xff] %v662_v60  ;;  %v93_v44 = vld [vmem:[#allocation4 + $0x1e0] sm:$0xff]  ;;  %v94_v45 = vld [vmem:[#allocation4 + $0x1e8] sm:$0xff] }
  0x2d   :  { %959 = vst [vmem:[#allocation7 + $0x120] sm:$0xff] %v663_v61  ;;  %960 = vst [vmem:[#allocation7 + $0x128] sm:$0xff] %v664_v62  ;;  %v666_v8 = vadd.f32 %v1335_v2, %v369_v63  ;;  %v373_v9 = vmul.f32 %v1330_v0, %v76_v57  ;;  %v374_v10 = vmul.f32 %v1330_v0, %v77_v58  ;;  %v95_v50 = vld [vmem:[#allocation4 + $0x1f0] sm:$0xff]  ;;  %v96_v55 = vld [vmem:[#allocation4 + $0x1f8] sm:$0xff] }
  0x2e   :  { %v375_v11 = vmul.f32 %v1330_v0, %v78_v59  ;;  %961 = vst [vmem:[#allocation7 + $0x130] sm:$0xff] %v665_v3  ;;  %v667_v15 = vadd.f32 %v1335_v2, %v370_v4  ;;  %v668_v16 = vadd.f32 %v1335_v2, %v371_v5  ;;  %v669_v17 = vadd.f32 %v1335_v2, %v372_v6  ;;  %v97_v60 = vld [vmem:[#allocation4 + $0x200] sm:$0xff]  ;;  %v98_v61 = vld [vmem:[#allocation4 + $0x208] sm:$0xff]  ;;  %v99_v62 = vld [vmem:[#allocation4 + $0x210] sm:$0xff] }
  0x2f   :  { %v376_v18 = vmul.f32 %v1330_v0, %v79_v1  ;;  %962 = vst [vmem:[#allocation7 + $0x138] sm:$0xff] %v666_v8  ;;  %v670_v22 = vadd.f32 %v1335_v2, %v373_v9  ;;  %v671_v23 = vadd.f32 %v1335_v2, %v374_v10  ;;  %v377_v25 = vmul.f32 %v1330_v0, %v80_v7  ;;  %v100_v5 = vld [vmem:[#allocation4 + $0x218] sm:$0xff]  ;;  %v101_v6 = vld [vmem:[#allocation4 + $0x220] sm:$0xff]  ;;  %v102_v7 = vld [vmem:[#allocation4 + $0x228] sm:$0xff] }
  0x30   :  { %v672_v24 = vadd.f32 %v1335_v2, %v375_v11  ;;  %963 = vst [vmem:[#allocation7 + $0x140] sm:$0xff] %v667_v15  ;;  %964 = vst [vmem:[#allocation7 + $0x148] sm:$0xff] %v668_v16  ;;  %v378_v28 = vmul.f32 %v1330_v0, %v81_v12  ;;  %v379_v29 = vmul.f32 %v1330_v0, %v82_v13  ;;  %v103_v12 = vld [vmem:[#allocation4 + $0x230] sm:$0xff] }
  0x31   :  { %965 = vst [vmem:[#allocation7 + $0x150] sm:$0xff] %v669_v17  ;;  %v673_v27 = vadd.f32 %v1335_v2, %v376_v18  ;;  %v380_v30 = vmul.f32 %v1330_v0, %v83_v14  ;;  %966 = vst [vmem:[#allocation7 + $0x158] sm:$0xff] %v670_v22  ;;  %v674_v32 = vadd.f32 %v1335_v2, %v377_v25  ;;  %v104_v17 = vld [vmem:[#allocation4 + $0x238] sm:$0xff]  ;;  %v105_v22 = vld [vmem:[#allocation4 + $0x240] sm:$0xff] }
  0x32   :  { %967 = vst [vmem:[#allocation7 + $0x160] sm:$0xff] %v671_v23  ;;  %968 = vst [vmem:[#allocation7 + $0x168] sm:$0xff] %v672_v24  ;;  %v381_v33 = vmul.f32 %v1330_v0, %v84_v19  ;;  %v382_v34 = vmul.f32 %v1330_v0, %v85_v20  ;;  %v383_v35 = vmul.f32 %v1330_v0, %v86_v21  ;;  %v106_v23 = vld [vmem:[#allocation4 + $0x248] sm:$0xff]  ;;  %v107_v24 = vld [vmem:[#allocation4 + $0x250] sm:$0xff] }
  0x33   :  { %969 = vst [vmem:[#allocation7 + $0x170] sm:$0xff] %v673_v27  ;;  %v675_v39 = vadd.f32 %v1335_v2, %v378_v28  ;;  %v676_v40 = vadd.f32 %v1335_v2, %v379_v29  ;;  %v677_v41 = vadd.f32 %v1335_v2, %v380_v30  ;;  %v384_v42 = vmul.f32 %v1330_v0, %v87_v26  ;;  %v108_v29 = vld [vmem:[#allocation4 + $0x258] sm:$0xff]  ;;  %v109_v30 = vld [vmem:[#allocation4 + $0x260] sm:$0xff] }
  0x34   :  { %970 = vst [vmem:[#allocation7 + $0x178] sm:$0xff] %v674_v32  ;;  %v678_v46 = vadd.f32 %v1335_v2, %v381_v33  ;;  %v679_v47 = vadd.f32 %v1335_v2, %v382_v34  ;;  %v680_v48 = vadd.f32 %v1335_v2, %v383_v35  ;;  %v385_v49 = vmul.f32 %v1330_v0, %v88_v31  ;;  %v110_v31 = vld [vmem:[#allocation4 + $0x268] sm:$0xff] }
  0x35   :  { %971 = vst [vmem:[#allocation7 + $0x180] sm:$0xff] %v675_v39  ;;  %972 = vst [vmem:[#allocation7 + $0x188] sm:$0xff] %v676_v40  ;;  %v681_v51 = vadd.f32 %v1335_v2, %v384_v42  ;;  %v386_v52 = vmul.f32 %v1330_v0, %v89_v36  ;;  %v387_v53 = vmul.f32 %v1330_v0, %v90_v37  ;;  %v111_v36 = vld [vmem:[#allocation4 + $0x270] sm:$0xff] }
  0x36   :  { %973 = vst [vmem:[#allocation7 + $0x190] sm:$0xff] %v677_v41  ;;  %v388_v54 = vmul.f32 %v1330_v0, %v91_v38  ;;  %974 = vst [vmem:[#allocation7 + $0x198] sm:$0xff] %v678_v46  ;;  %v682_v56 = vadd.f32 %v1335_v2, %v385_v49  ;;  %v389_v57 = vmul.f32 %v1330_v0, %v92_v43  ;;  %v112_v41 = vld [vmem:[#allocation4 + $0x278] sm:$0xff]  ;;  %v113_v46 = vld [vmem:[#allocation4 + $0x280] sm:$0xff] }
  0x37   :  { %975 = vst [vmem:[#allocation7 + $0x1a0] sm:$0xff] %v679_v47  ;;  %976 = vst [vmem:[#allocation7 + $0x1a8] sm:$0xff] %v680_v48  ;;  %v390_v58 = vmul.f32 %v1330_v0, %v93_v44  ;;  %v391_v59 = vmul.f32 %v1330_v0, %v94_v45  ;;  %v683_v63 = vadd.f32 %v1335_v2, %v386_v52  ;;  %v114_v47 = vld [vmem:[#allocation4 + $0x288] sm:$0xff]  ;;  %v115_v48 = vld [vmem:[#allocation4 + $0x290] sm:$0xff] }
  0x38   :  { %977 = vst [vmem:[#allocation7 + $0x1b0] sm:$0xff] %v681_v51  ;;  %v684_v1 = vadd.f32 %v1335_v2, %v387_v53  ;;  %v685_v3 = vadd.f32 %v1335_v2, %v388_v54  ;;  %v392_v4 = vmul.f32 %v1330_v0, %v95_v50  ;;  %978 = vst [vmem:[#allocation7 + $0x1b8] sm:$0xff] %v682_v56  ;;  %v116_v53 = vld [vmem:[#allocation4 + $0x298] sm:$0xff]  ;;  %v117_v54 = vld [vmem:[#allocation4 + $0x2a0] sm:$0xff] }
  0x39   :  { %v686_v8 = vadd.f32 %v1335_v2, %v389_v57  ;;  %v687_v9 = vadd.f32 %v1335_v2, %v390_v58  ;;  %v688_v10 = vadd.f32 %v1335_v2, %v391_v59  ;;  %v393_v11 = vmul.f32 %v1330_v0, %v96_v55  ;;  %979 = vst [vmem:[#allocation7 + $0x1c0] sm:$0xff] %v683_v63  ;;  %v118_v55 = vld [vmem:[#allocation4 + $0x2a8] sm:$0xff] }
  0x3a   :  { %980 = vst [vmem:[#allocation7 + $0x1c8] sm:$0xff] %v684_v1  ;;  %981 = vst [vmem:[#allocation7 + $0x1d0] sm:$0xff] %v685_v3  ;;  %v689_v13 = vadd.f32 %v1335_v2, %v392_v4  ;;  %v394_v14 = vmul.f32 %v1330_v0, %v97_v60  ;;  %v395_v15 = vmul.f32 %v1330_v0, %v98_v61  ;;  %v119_v60 = vld [vmem:[#allocation4 + $0x2b0] sm:$0xff]  ;;  %v120_v3 = vld [vmem:[#allocation4 + $0x2b8] sm:$0xff] }
  0x3b   :  { %v396_v16 = vmul.f32 %v1330_v0, %v99_v62  ;;  %982 = vst [vmem:[#allocation7 + $0x1d8] sm:$0xff] %v686_v8  ;;  %983 = vst [vmem:[#allocation7 + $0x1e0] sm:$0xff] %v687_v9  ;;  %v690_v18 = vadd.f32 %v1335_v2, %v393_v11  ;;  %v397_v19 = vmul.f32 %v1330_v0, %v100_v5  ;;  %v121_v8 = vld [vmem:[#allocation4 + $0x2c0] sm:$0xff]  ;;  %v122_v9 = vld [vmem:[#allocation4 + $0x2c8] sm:$0xff] }
  0x3c   :  { %984 = vst [vmem:[#allocation7 + $0x1e8] sm:$0xff] %v688_v10  ;;  %v398_v20 = vmul.f32 %v1330_v0, %v101_v6  ;;  %v399_v21 = vmul.f32 %v1330_v0, %v102_v7  ;;  %985 = vst [vmem:[#allocation7 + $0x1f0] sm:$0xff] %v689_v13  ;;  %v691_v25 = vadd.f32 %v1335_v2, %v394_v14  ;;  %v123_v10 = vld [vmem:[#allocation4 + $0x2d0] sm:$0xff] }
  0x3d   :  { %v692_v26 = vadd.f32 %v1335_v2, %v395_v15  ;;  %v693_v27 = vadd.f32 %v1335_v2, %v396_v16  ;;  %v400_v28 = vmul.f32 %v1330_v0, %v103_v12  ;;  %986 = vst [vmem:[#allocation7 + $0x1f8] sm:$0xff] %v690_v18  ;;  %v694_v32 = vadd.f32 %v1335_v2, %v397_v19  ;;  %v124_v15 = vld [vmem:[#allocation4 + $0x2d8] sm:$0xff]  ;;  %v125_v16 = vld [vmem:[#allocation4 + $0x2e0] sm:$0xff] }
  0x3e   :  { %v695_v33 = vadd.f32 %v1335_v2, %v398_v20  ;;  %v696_v34 = vadd.f32 %v1335_v2, %v399_v21  ;;  %v401_v35 = vmul.f32 %v1330_v0, %v104_v17  ;;  %987 = vst [vmem:[#allocation7 + $0x200] sm:$0xff] %v691_v25  ;;  %v402_v38 = vmul.f32 %v1330_v0, %v105_v22  ;;  %v126_v17 = vld [vmem:[#allocation4 + $0x2e8] sm:$0xff]  ;;  %v127_v22 = vld [vmem:[#allocation4 + $0x2f0] sm:$0xff] }
  0x3f   :  { %988 = vst [vmem:[#allocation7 + $0x208] sm:$0xff] %v692_v26  ;;  %989 = vst [vmem:[#allocation7 + $0x210] sm:$0xff] %v693_v27  ;;  %v697_v37 = vadd.f32 %v1335_v2, %v400_v28  ;;  %v403_v39 = vmul.f32 %v1330_v0, %v106_v23  ;;  %v404_v40 = vmul.f32 %v1330_v0, %v107_v24  ;;  %v128_v27 = vld [vmem:[#allocation4 + $0x2f8] sm:$0xff] }
  0x40   :  { %990 = vst [vmem:[#allocation7 + $0x218] sm:$0xff] %v694_v32  ;;  %991 = vst [vmem:[#allocation7 + $0x220] sm:$0xff] %v695_v33  ;;  %v698_v42 = vadd.f32 %v1335_v2, %v401_v35  ;;  %v405_v43 = vmul.f32 %v1330_v0, %v108_v29  ;;  %v406_v44 = vmul.f32 %v1330_v0, %v109_v30  ;;  %v129_v32 = vld [vmem:[#allocation4 + $0x300] sm:$0xff]  ;;  %v130_v33 = vld [vmem:[#allocation4 + $0x308] sm:$0xff] }
  0x41   :  { %992 = vst [vmem:[#allocation7 + $0x228] sm:$0xff] %v696_v34  ;;  %v407_v45 = vmul.f32 %v1330_v0, %v110_v31  ;;  %993 = vst [vmem:[#allocation7 + $0x230] sm:$0xff] %v697_v37  ;;  %v699_v49 = vadd.f32 %v1335_v2, %v402_v38  ;;  %v700_v50 = vadd.f32 %v1335_v2, %v403_v39  ;;  %v131_v34 = vld [vmem:[#allocation4 + $0x310] sm:$0xff]  ;;  %v132_v39 = vld [vmem:[#allocation4 + $0x318] sm:$0xff] }
  0x42   :  { %v701_v51 = vadd.f32 %v1335_v2, %v404_v40  ;;  %v408_v52 = vmul.f32 %v1330_v0, %v111_v36  ;;  %994 = vst [vmem:[#allocation7 + $0x238] sm:$0xff] %v698_v42  ;;  %v702_v56 = vadd.f32 %v1335_v2, %v405_v43  ;;  %v703_v57 = vadd.f32 %v1335_v2, %v406_v44  ;;  %v133_v40 = vld [vmem:[#allocation4 + $0x320] sm:$0xff] }
  0x43   :  { %v704_v58 = vadd.f32 %v1335_v2, %v407_v45  ;;  %v409_v59 = vmul.f32 %v1330_v0, %v112_v41  ;;  %995 = vst [vmem:[#allocation7 + $0x240] sm:$0xff] %v699_v49  ;;  %996 = vst [vmem:[#allocation7 + $0x248] sm:$0xff] %v700_v50  ;;  %v410_v62 = vmul.f32 %v1330_v0, %v113_v46  ;;  %v134_v41 = vld [vmem:[#allocation4 + $0x328] sm:$0xff]  ;;  %v135_v46 = vld [vmem:[#allocation4 + $0x330] sm:$0xff] }
  0x44   :  { %997 = vst [vmem:[#allocation7 + $0x250] sm:$0xff] %v701_v51  ;;  %v705_v61 = vadd.f32 %v1335_v2, %v408_v52  ;;  %v411_v63 = vmul.f32 %v1330_v0, %v114_v47  ;;  %v412_v1 = vmul.f32 %v1330_v0, %v115_v48  ;;  %998 = vst [vmem:[#allocation7 + $0x258] sm:$0xff] %v702_v56  ;;  %v136_v51 = vld [vmem:[#allocation4 + $0x338] sm:$0xff]  ;;  %v137_v56 = vld [vmem:[#allocation4 + $0x340] sm:$0xff] }
  0x45   :  { %999 = vst [vmem:[#allocation7 + $0x260] sm:$0xff] %v703_v57  ;;  %1000 = vst [vmem:[#allocation7 + $0x268] sm:$0xff] %v704_v58  ;;  %v706_v4 = vadd.f32 %v1335_v2, %v409_v59  ;;  %v413_v5 = vmul.f32 %v1330_v0, %v116_v53  ;;  %v414_v6 = vmul.f32 %v1330_v0, %v117_v54  ;;  %v138_v57 = vld [vmem:[#allocation4 + $0x348] sm:$0xff]  ;;  %v139_v58 = vld [vmem:[#allocation4 + $0x350] sm:$0xff] }
  0x46   :  { %v415_v7 = vmul.f32 %v1330_v0, %v118_v55  ;;  %1001 = vst [vmem:[#allocation7 + $0x270] sm:$0xff] %v705_v61  ;;  %v707_v11 = vadd.f32 %v1335_v2, %v410_v62  ;;  %v708_v12 = vadd.f32 %v1335_v2, %v411_v63  ;;  %v709_v13 = vadd.f32 %v1335_v2, %v412_v1  ;;  %v140_v63 = vld [vmem:[#allocation4 + $0x358] sm:$0xff]  ;;  %v141_v1 = vld [vmem:[#allocation4 + $0x360] sm:$0xff] }
  0x47   :  { %v416_v14 = vmul.f32 %v1330_v0, %v119_v60  ;;  %1002 = vst [vmem:[#allocation7 + $0x278] sm:$0xff] %v706_v4  ;;  %v710_v18 = vadd.f32 %v1335_v2, %v413_v5  ;;  %v711_v19 = vadd.f32 %v1335_v2, %v414_v6  ;;  %v417_v21 = vmul.f32 %v1330_v0, %v120_v3  ;;  %v142_v3 = vld [vmem:[#allocation4 + $0x368] sm:$0xff] }
  0x48   :  { %v712_v20 = vadd.f32 %v1335_v2, %v415_v7  ;;  %1003 = vst [vmem:[#allocation7 + $0x280] sm:$0xff] %v707_v11  ;;  %1004 = vst [vmem:[#allocation7 + $0x288] sm:$0xff] %v708_v12  ;;  %v418_v24 = vmul.f32 %v1330_v0, %v121_v8  ;;  %v419_v25 = vmul.f32 %v1330_v0, %v122_v9  ;;  %v143_v8 = vld [vmem:[#allocation4 + $0x370] sm:$0xff] }
  0x49   :  { %1005 = vst [vmem:[#allocation7 + $0x290] sm:$0xff] %v709_v13  ;;  %v713_v23 = vadd.f32 %v1335_v2, %v416_v14  ;;  %v420_v26 = vmul.f32 %v1330_v0, %v123_v10  ;;  %1006 = vst [vmem:[#allocation7 + $0x298] sm:$0xff] %v710_v18  ;;  %v714_v28 = vadd.f32 %v1335_v2, %v417_v21  ;;  %v144_v13 = vld [vmem:[#allocation4 + $0x378] sm:$0xff]  ;;  %v145_v18 = vld [vmem:[#allocation4 + $0x380] sm:$0xff] }
  0x4a   :  { %1007 = vst [vmem:[#allocation7 + $0x2a0] sm:$0xff] %v711_v19  ;;  %1008 = vst [vmem:[#allocation7 + $0x2a8] sm:$0xff] %v712_v20  ;;  %v421_v29 = vmul.f32 %v1330_v0, %v124_v15  ;;  %v422_v30 = vmul.f32 %v1330_v0, %v125_v16  ;;  %v423_v31 = vmul.f32 %v1330_v0, %v126_v17  ;;  %v146_v19 = vld [vmem:[#allocation4 + $0x388] sm:$0xff]  ;;  %v147_v20 = vld [vmem:[#allocation4 + $0x390] sm:$0xff] }
  0x4b   :  { %1009 = vst [vmem:[#allocation7 + $0x2b0] sm:$0xff] %v713_v23  ;;  %v715_v35 = vadd.f32 %v1335_v2, %v418_v24  ;;  %v716_v36 = vadd.f32 %v1335_v2, %v419_v25  ;;  %v717_v37 = vadd.f32 %v1335_v2, %v420_v26  ;;  %v424_v38 = vmul.f32 %v1330_v0, %v127_v22  ;;  %v148_v25 = vld [vmem:[#allocation4 + $0x398] sm:$0xff]  ;;  %v149_v26 = vld [vmem:[#allocation4 + $0x3a0] sm:$0xff] }
  0x4c   :  { %1010 = vst [vmem:[#allocation7 + $0x2b8] sm:$0xff] %v714_v28  ;;  %v718_v42 = vadd.f32 %v1335_v2, %v421_v29  ;;  %v719_v43 = vadd.f32 %v1335_v2, %v422_v30  ;;  %v720_v44 = vadd.f32 %v1335_v2, %v423_v31  ;;  %v425_v45 = vmul.f32 %v1330_v0, %v128_v27  ;;  %v150_v27 = vld [vmem:[#allocation4 + $0x3a8] sm:$0xff] }
  0x4d   :  { %1011 = vst [vmem:[#allocation7 + $0x2c0] sm:$0xff] %v715_v35  ;;  %1012 = vst [vmem:[#allocation7 + $0x2c8] sm:$0xff] %v716_v36  ;;  %v721_v47 = vadd.f32 %v1335_v2, %v424_v38  ;;  %v426_v48 = vmul.f32 %v1330_v0, %v129_v32  ;;  %v427_v49 = vmul.f32 %v1330_v0, %v130_v33  ;;  %v151_v32 = vld [vmem:[#allocation4 + $0x3b0] sm:$0xff] }
  0x4e   :  { %1013 = vst [vmem:[#allocation7 + $0x2d0] sm:$0xff] %v717_v37  ;;  %v428_v50 = vmul.f32 %v1330_v0, %v131_v34  ;;  %1014 = vst [vmem:[#allocation7 + $0x2d8] sm:$0xff] %v718_v42  ;;  %v722_v52 = vadd.f32 %v1335_v2, %v425_v45  ;;  %v429_v53 = vmul.f32 %v1330_v0, %v132_v39  ;;  %v152_v37 = vld [vmem:[#allocation4 + $0x3b8] sm:$0xff]  ;;  %v153_v42 = vld [vmem:[#allocation4 + $0x3c0] sm:$0xff] }
  0x4f   :  { %1015 = vst [vmem:[#allocation7 + $0x2e0] sm:$0xff] %v719_v43  ;;  %1016 = vst [vmem:[#allocation7 + $0x2e8] sm:$0xff] %v720_v44  ;;  %v430_v54 = vmul.f32 %v1330_v0, %v133_v40  ;;  %v431_v55 = vmul.f32 %v1330_v0, %v134_v41  ;;  %v723_v59 = vadd.f32 %v1335_v2, %v426_v48  ;;  %v154_v43 = vld [vmem:[#allocation4 + $0x3c8] sm:$0xff]  ;;  %v155_v44 = vld [vmem:[#allocation4 + $0x3d0] sm:$0xff] }
  0x50   :  { %1017 = vst [vmem:[#allocation7 + $0x2f0] sm:$0xff] %v721_v47  ;;  %v724_v60 = vadd.f32 %v1335_v2, %v427_v49  ;;  %v725_v61 = vadd.f32 %v1335_v2, %v428_v50  ;;  %v432_v62 = vmul.f32 %v1330_v0, %v135_v46  ;;  %1018 = vst [vmem:[#allocation7 + $0x2f8] sm:$0xff] %v722_v52  ;;  %v156_v49 = vld [vmem:[#allocation4 + $0x3d8] sm:$0xff]  ;;  %v157_v50 = vld [vmem:[#allocation4 + $0x3e0] sm:$0xff] }
  0x51   :  { %v726_v4 = vadd.f32 %v1335_v2, %v429_v53  ;;  %v727_v5 = vadd.f32 %v1335_v2, %v430_v54  ;;  %v728_v6 = vadd.f32 %v1335_v2, %v431_v55  ;;  %v433_v7 = vmul.f32 %v1330_v0, %v136_v51  ;;  %1019 = vst [vmem:[#allocation7 + $0x300] sm:$0xff] %v723_v59  ;;  %v158_v51 = vld [vmem:[#allocation4 + $0x3e8] sm:$0xff] }
  0x52   :  { %1020 = vst [vmem:[#allocation7 + $0x308] sm:$0xff] %v724_v60  ;;  %1021 = vst [vmem:[#allocation7 + $0x310] sm:$0xff] %v725_v61  ;;  %v729_v9 = vadd.f32 %v1335_v2, %v432_v62  ;;  %v434_v10 = vmul.f32 %v1330_v0, %v137_v56  ;;  %v435_v11 = vmul.f32 %v1330_v0, %v138_v57  ;;  %v159_v56 = vld [vmem:[#allocation4 + $0x3f0] sm:$0xff]  ;;  %v160_v61 = vld [vmem:[#allocation4 + $0x3f8] sm:$0xff] }
  0x53   :  { %v436_v12 = vmul.f32 %v1330_v0, %v139_v58  ;;  %1022 = vst [vmem:[#allocation7 + $0x318] sm:$0xff] %v726_v4  ;;  %1023 = vst [vmem:[#allocation7 + $0x320] sm:$0xff] %v727_v5  ;;  %v730_v14 = vadd.f32 %v1335_v2, %v433_v7  ;;  %v437_v15 = vmul.f32 %v1330_v0, %v140_v63  ;;  %v161_v4 = vld [vmem:[#allocation4 + $0x400] sm:$0xff]  ;;  %v162_v5 = vld [vmem:[#allocation4 + $0x408] sm:$0xff] }
  0x54   :  { %1024 = vst [vmem:[#allocation7 + $0x328] sm:$0xff] %v728_v6  ;;  %v438_v16 = vmul.f32 %v1330_v0, %v141_v1  ;;  %v439_v17 = vmul.f32 %v1330_v0, %v142_v3  ;;  %1025 = vst [vmem:[#allocation7 + $0x330] sm:$0xff] %v729_v9  ;;  %v731_v21 = vadd.f32 %v1335_v2, %v434_v10  ;;  %v163_v6 = vld [vmem:[#allocation4 + $0x410] sm:$0xff] }
  0x55   :  { %v732_v22 = vadd.f32 %v1335_v2, %v435_v11  ;;  %v733_v23 = vadd.f32 %v1335_v2, %v436_v12  ;;  %v440_v24 = vmul.f32 %v1330_v0, %v143_v8  ;;  %1026 = vst [vmem:[#allocation7 + $0x338] sm:$0xff] %v730_v14  ;;  %v734_v28 = vadd.f32 %v1335_v2, %v437_v15  ;;  %v164_v11 = vld [vmem:[#allocation4 + $0x418] sm:$0xff]  ;;  %v165_v12 = vld [vmem:[#allocation4 + $0x420] sm:$0xff] }
  0x56   :  { %v735_v29 = vadd.f32 %v1335_v2, %v438_v16  ;;  %v736_v30 = vadd.f32 %v1335_v2, %v439_v17  ;;  %v441_v31 = vmul.f32 %v1330_v0, %v144_v13  ;;  %1027 = vst [vmem:[#allocation7 + $0x340] sm:$0xff] %v731_v21  ;;  %v442_v34 = vmul.f32 %v1330_v0, %v145_v18  ;;  %v166_v13 = vld [vmem:[#allocation4 + $0x428] sm:$0xff]  ;;  %v167_v18 = vld [vmem:[#allocation4 + $0x430] sm:$0xff] }
  0x57   :  { %1028 = vst [vmem:[#allocation7 + $0x348] sm:$0xff] %v732_v22  ;;  %1029 = vst [vmem:[#allocation7 + $0x350] sm:$0xff] %v733_v23  ;;  %v737_v33 = vadd.f32 %v1335_v2, %v440_v24  ;;  %v443_v35 = vmul.f32 %v1330_v0, %v146_v19  ;;  %v444_v36 = vmul.f32 %v1330_v0, %v147_v20  ;;  %v168_v23 = vld [vmem:[#allocation4 + $0x438] sm:$0xff] }
  0x58   :  { %1030 = vst [vmem:[#allocation7 + $0x358] sm:$0xff] %v734_v28  ;;  %1031 = vst [vmem:[#allocation7 + $0x360] sm:$0xff] %v735_v29  ;;  %v738_v38 = vadd.f32 %v1335_v2, %v441_v31  ;;  %v445_v39 = vmul.f32 %v1330_v0, %v148_v25  ;;  %v446_v40 = vmul.f32 %v1330_v0, %v149_v26  ;;  %v169_v28 = vld [vmem:[#allocation4 + $0x440] sm:$0xff]  ;;  %v170_v29 = vld [vmem:[#allocation4 + $0x448] sm:$0xff] }
  0x59   :  { %1032 = vst [vmem:[#allocation7 + $0x368] sm:$0xff] %v736_v30  ;;  %v447_v41 = vmul.f32 %v1330_v0, %v150_v27  ;;  %1033 = vst [vmem:[#allocation7 + $0x370] sm:$0xff] %v737_v33  ;;  %v739_v45 = vadd.f32 %v1335_v2, %v442_v34  ;;  %v740_v46 = vadd.f32 %v1335_v2, %v443_v35  ;;  %v171_v30 = vld [vmem:[#allocation4 + $0x450] sm:$0xff]  ;;  %v172_v35 = vld [vmem:[#allocation4 + $0x458] sm:$0xff] }
  0x5a   :  { %v741_v47 = vadd.f32 %v1335_v2, %v444_v36  ;;  %v448_v48 = vmul.f32 %v1330_v0, %v151_v32  ;;  %1034 = vst [vmem:[#allocation7 + $0x378] sm:$0xff] %v738_v38  ;;  %v742_v52 = vadd.f32 %v1335_v2, %v445_v39  ;;  %v743_v53 = vadd.f32 %v1335_v2, %v446_v40  ;;  %v173_v36 = vld [vmem:[#allocation4 + $0x460] sm:$0xff] }
  0x5b   :  { %v744_v54 = vadd.f32 %v1335_v2, %v447_v41  ;;  %v449_v55 = vmul.f32 %v1330_v0, %v152_v37  ;;  %1035 = vst [vmem:[#allocation7 + $0x380] sm:$0xff] %v739_v45  ;;  %1036 = vst [vmem:[#allocation7 + $0x388] sm:$0xff] %v740_v46  ;;  %v450_v58 = vmul.f32 %v1330_v0, %v153_v42  ;;  %v174_v37 = vld [vmem:[#allocation4 + $0x468] sm:$0xff]  ;;  %v175_v42 = vld [vmem:[#allocation4 + $0x470] sm:$0xff] }
  0x5c   :  { %1037 = vst [vmem:[#allocation7 + $0x390] sm:$0xff] %v741_v47  ;;  %v745_v57 = vadd.f32 %v1335_v2, %v448_v48  ;;  %v451_v59 = vmul.f32 %v1330_v0, %v154_v43  ;;  %v452_v60 = vmul.f32 %v1330_v0, %v155_v44  ;;  %1038 = vst [vmem:[#allocation7 + $0x398] sm:$0xff] %v742_v52  ;;  %v176_v47 = vld [vmem:[#allocation4 + $0x478] sm:$0xff]  ;;  %v177_v52 = vld [vmem:[#allocation4 + $0x480] sm:$0xff] }
  0x5d   :  { %1039 = vst [vmem:[#allocation7 + $0x3a0] sm:$0xff] %v743_v53  ;;  %1040 = vst [vmem:[#allocation7 + $0x3a8] sm:$0xff] %v744_v54  ;;  %v746_v62 = vadd.f32 %v1335_v2, %v449_v55  ;;  %v453_v63 = vmul.f32 %v1330_v0, %v156_v49  ;;  %v454_v1 = vmul.f32 %v1330_v0, %v157_v50  ;;  %v178_v53 = vld [vmem:[#allocation4 + $0x488] sm:$0xff]  ;;  %v179_v54 = vld [vmem:[#allocation4 + $0x490] sm:$0xff] }
  0x5e   :  { %v455_v3 = vmul.f32 %v1330_v0, %v158_v51  ;;  %1041 = vst [vmem:[#allocation7 + $0x3b0] sm:$0xff] %v745_v57  ;;  %v747_v7 = vadd.f32 %v1335_v2, %v450_v58  ;;  %v748_v8 = vadd.f32 %v1335_v2, %v451_v59  ;;  %v749_v9 = vadd.f32 %v1335_v2, %v452_v60  ;;  %v180_v59 = vld [vmem:[#allocation4 + $0x498] sm:$0xff]  ;;  %v181_v60 = vld [vmem:[#allocation4 + $0x4a0] sm:$0xff] }
  0x5f   :  { %v456_v10 = vmul.f32 %v1330_v0, %v159_v56  ;;  %1042 = vst [vmem:[#allocation7 + $0x3b8] sm:$0xff] %v746_v62  ;;  %v750_v14 = vadd.f32 %v1335_v2, %v453_v63  ;;  %v751_v15 = vadd.f32 %v1335_v2, %v454_v1  ;;  %v457_v17 = vmul.f32 %v1330_v0, %v160_v61  ;;  %v182_v61 = vld [vmem:[#allocation4 + $0x4a8] sm:$0xff] }
  0x60   :  { %v752_v16 = vadd.f32 %v1335_v2, %v455_v3  ;;  %1043 = vst [vmem:[#allocation7 + $0x3c0] sm:$0xff] %v747_v7  ;;  %1044 = vst [vmem:[#allocation7 + $0x3c8] sm:$0xff] %v748_v8  ;;  %v458_v20 = vmul.f32 %v1330_v0, %v161_v4  ;;  %v459_v21 = vmul.f32 %v1330_v0, %v162_v5  ;;  %v183_v4 = vld [vmem:[#allocation4 + $0x4b0] sm:$0xff] }
  0x61   :  { %1045 = vst [vmem:[#allocation7 + $0x3d0] sm:$0xff] %v749_v9  ;;  %v753_v19 = vadd.f32 %v1335_v2, %v456_v10  ;;  %v460_v22 = vmul.f32 %v1330_v0, %v163_v6  ;;  %1046 = vst [vmem:[#allocation7 + $0x3d8] sm:$0xff] %v750_v14  ;;  %v754_v24 = vadd.f32 %v1335_v2, %v457_v17  ;;  %v184_v9 = vld [vmem:[#allocation4 + $0x4b8] sm:$0xff]  ;;  %v185_v14 = vld [vmem:[#allocation4 + $0x4c0] sm:$0xff] }
  0x62   :  { %1047 = vst [vmem:[#allocation7 + $0x3e0] sm:$0xff] %v751_v15  ;;  %1048 = vst [vmem:[#allocation7 + $0x3e8] sm:$0xff] %v752_v16  ;;  %v461_v25 = vmul.f32 %v1330_v0, %v164_v11  ;;  %v462_v26 = vmul.f32 %v1330_v0, %v165_v12  ;;  %v463_v27 = vmul.f32 %v1330_v0, %v166_v13  ;;  %v186_v15 = vld [vmem:[#allocation4 + $0x4c8] sm:$0xff]  ;;  %v187_v16 = vld [vmem:[#allocation4 + $0x4d0] sm:$0xff] }
  0x63   :  { %1049 = vst [vmem:[#allocation7 + $0x3f0] sm:$0xff] %v753_v19  ;;  %v755_v31 = vadd.f32 %v1335_v2, %v458_v20  ;;  %v756_v32 = vadd.f32 %v1335_v2, %v459_v21  ;;  %v757_v33 = vadd.f32 %v1335_v2, %v460_v22  ;;  %v464_v34 = vmul.f32 %v1330_v0, %v167_v18  ;;  %v188_v21 = vld [vmem:[#allocation4 + $0x4d8] sm:$0xff]  ;;  %v189_v22 = vld [vmem:[#allocation4 + $0x4e0] sm:$0xff] }
  0x64   :  { %1050 = vst [vmem:[#allocation7 + $0x3f8] sm:$0xff] %v754_v24  ;;  %v758_v38 = vadd.f32 %v1335_v2, %v461_v25  ;;  %v759_v39 = vadd.f32 %v1335_v2, %v462_v26  ;;  %v760_v40 = vadd.f32 %v1335_v2, %v463_v27  ;;  %v465_v41 = vmul.f32 %v1330_v0, %v168_v23  ;;  %v190_v23 = vld [vmem:[#allocation4 + $0x4e8] sm:$0xff] }
  0x65   :  { %1051 = vst [vmem:[#allocation7 + $0x400] sm:$0xff] %v755_v31  ;;  %1052 = vst [vmem:[#allocation7 + $0x408] sm:$0xff] %v756_v32  ;;  %v761_v43 = vadd.f32 %v1335_v2, %v464_v34  ;;  %v466_v44 = vmul.f32 %v1330_v0, %v169_v28  ;;  %v467_v45 = vmul.f32 %v1330_v0, %v170_v29  ;;  %v191_v28 = vld [vmem:[#allocation4 + $0x4f0] sm:$0xff] }
  0x66   :  { %1053 = vst [vmem:[#allocation7 + $0x410] sm:$0xff] %v757_v33  ;;  %v468_v46 = vmul.f32 %v1330_v0, %v171_v30  ;;  %1054 = vst [vmem:[#allocation7 + $0x418] sm:$0xff] %v758_v38  ;;  %v762_v48 = vadd.f32 %v1335_v2, %v465_v41  ;;  %v469_v49 = vmul.f32 %v1330_v0, %v172_v35  ;;  %v192_v33 = vld [vmem:[#allocation4 + $0x4f8] sm:$0xff]  ;;  %v193_v38 = vld [vmem:[#allocation4 + $0x500] sm:$0xff] }
  0x67   :  { %1055 = vst [vmem:[#allocation7 + $0x420] sm:$0xff] %v759_v39  ;;  %1056 = vst [vmem:[#allocation7 + $0x428] sm:$0xff] %v760_v40  ;;  %v470_v50 = vmul.f32 %v1330_v0, %v173_v36  ;;  %v471_v51 = vmul.f32 %v1330_v0, %v174_v37  ;;  %v763_v55 = vadd.f32 %v1335_v2, %v466_v44  ;;  %v194_v39 = vld [vmem:[#allocation4 + $0x508] sm:$0xff]  ;;  %v195_v40 = vld [vmem:[#allocation4 + $0x510] sm:$0xff] }
  0x68   :  { %1057 = vst [vmem:[#allocation7 + $0x430] sm:$0xff] %v761_v43  ;;  %v764_v56 = vadd.f32 %v1335_v2, %v467_v45  ;;  %v765_v57 = vadd.f32 %v1335_v2, %v468_v46  ;;  %v472_v58 = vmul.f32 %v1330_v0, %v175_v42  ;;  %1058 = vst [vmem:[#allocation7 + $0x438] sm:$0xff] %v762_v48  ;;  %v196_v45 = vld [vmem:[#allocation4 + $0x518] sm:$0xff]  ;;  %v197_v46 = vld [vmem:[#allocation4 + $0x520] sm:$0xff] }
  0x69   :  { %v766_v62 = vadd.f32 %v1335_v2, %v469_v49  ;;  %v767_v63 = vadd.f32 %v1335_v2, %v470_v50  ;;  %v768_v1 = vadd.f32 %v1335_v2, %v471_v51  ;;  %v473_v3 = vmul.f32 %v1330_v0, %v176_v47  ;;  %1059 = vst [vmem:[#allocation7 + $0x440] sm:$0xff] %v763_v55  ;;  %v198_v47 = vld [vmem:[#allocation4 + $0x528] sm:$0xff] }
  0x6a   :  { %1060 = vst [vmem:[#allocation7 + $0x448] sm:$0xff] %v764_v56  ;;  %1061 = vst [vmem:[#allocation7 + $0x450] sm:$0xff] %v765_v57  ;;  %v769_v5 = vadd.f32 %v1335_v2, %v472_v58  ;;  %v474_v6 = vmul.f32 %v1330_v0, %v177_v52  ;;  %v475_v7 = vmul.f32 %v1330_v0, %v178_v53  ;;  %v199_v52 = vld [vmem:[#allocation4 + $0x530] sm:$0xff]  ;;  %v200_v57 = vld [vmem:[#allocation4 + $0x538] sm:$0xff] }
  0x6b   :  { %v476_v8 = vmul.f32 %v1330_v0, %v179_v54  ;;  %1062 = vst [vmem:[#allocation7 + $0x458] sm:$0xff] %v766_v62  ;;  %1063 = vst [vmem:[#allocation7 + $0x460] sm:$0xff] %v767_v63  ;;  %v770_v10 = vadd.f32 %v1335_v2, %v473_v3  ;;  %v477_v11 = vmul.f32 %v1330_v0, %v180_v59  ;;  %v201_v62 = vld [vmem:[#allocation4 + $0x540] sm:$0xff]  ;;  %v202_v63 = vld [vmem:[#allocation4 + $0x548] sm:$0xff] }
  0x6c   :  { %1064 = vst [vmem:[#allocation7 + $0x468] sm:$0xff] %v768_v1  ;;  %v478_v12 = vmul.f32 %v1330_v0, %v181_v60  ;;  %v479_v13 = vmul.f32 %v1330_v0, %v182_v61  ;;  %1065 = vst [vmem:[#allocation7 + $0x470] sm:$0xff] %v769_v5  ;;  %v771_v17 = vadd.f32 %v1335_v2, %v474_v6  ;;  %v203_v1 = vld [vmem:[#allocation4 + $0x550] sm:$0xff] }
  0x6d   :  { %v772_v18 = vadd.f32 %v1335_v2, %v475_v7  ;;  %v773_v19 = vadd.f32 %v1335_v2, %v476_v8  ;;  %v480_v20 = vmul.f32 %v1330_v0, %v183_v4  ;;  %1066 = vst [vmem:[#allocation7 + $0x478] sm:$0xff] %v770_v10  ;;  %v774_v24 = vadd.f32 %v1335_v2, %v477_v11  ;;  %v204_v7 = vld [vmem:[#allocation4 + $0x558] sm:$0xff]  ;;  %v205_v8 = vld [vmem:[#allocation4 + $0x560] sm:$0xff] }
  0x6e   :  { %v775_v25 = vadd.f32 %v1335_v2, %v478_v12  ;;  %v776_v26 = vadd.f32 %v1335_v2, %v479_v13  ;;  %v481_v27 = vmul.f32 %v1330_v0, %v184_v9  ;;  %1067 = vst [vmem:[#allocation7 + $0x480] sm:$0xff] %v771_v17  ;;  %v482_v30 = vmul.f32 %v1330_v0, %v185_v14  ;;  %v206_v9 = vld [vmem:[#allocation4 + $0x568] sm:$0xff]  ;;  %v207_v14 = vld [vmem:[#allocation4 + $0x570] sm:$0xff] }
  0x6f   :  { %1068 = vst [vmem:[#allocation7 + $0x488] sm:$0xff] %v772_v18  ;;  %1069 = vst [vmem:[#allocation7 + $0x490] sm:$0xff] %v773_v19  ;;  %v777_v29 = vadd.f32 %v1335_v2, %v480_v20  ;;  %v483_v31 = vmul.f32 %v1330_v0, %v186_v15  ;;  %v484_v32 = vmul.f32 %v1330_v0, %v187_v16  ;;  %v208_v19 = vld [vmem:[#allocation4 + $0x578] sm:$0xff] }
  0x70   :  { %1070 = vst [vmem:[#allocation7 + $0x498] sm:$0xff] %v774_v24  ;;  %1071 = vst [vmem:[#allocation7 + $0x4a0] sm:$0xff] %v775_v25  ;;  %v778_v34 = vadd.f32 %v1335_v2, %v481_v27  ;;  %v485_v35 = vmul.f32 %v1330_v0, %v188_v21  ;;  %v486_v36 = vmul.f32 %v1330_v0, %v189_v22  ;;  %v209_v24 = vld [vmem:[#allocation4 + $0x580] sm:$0xff]  ;;  %v210_v25 = vld [vmem:[#allocation4 + $0x588] sm:$0xff] }
  0x71   :  { %1072 = vst [vmem:[#allocation7 + $0x4a8] sm:$0xff] %v776_v26  ;;  %v487_v37 = vmul.f32 %v1330_v0, %v190_v23  ;;  %1073 = vst [vmem:[#allocation7 + $0x4b0] sm:$0xff] %v777_v29  ;;  %v779_v41 = vadd.f32 %v1335_v2, %v482_v30  ;;  %v780_v42 = vadd.f32 %v1335_v2, %v483_v31  ;;  %v211_v26 = vld [vmem:[#allocation4 + $0x590] sm:$0xff]  ;;  %v212_v31 = vld [vmem:[#allocation4 + $0x598] sm:$0xff] }
  0x72   :  { %v781_v43 = vadd.f32 %v1335_v2, %v484_v32  ;;  %v488_v44 = vmul.f32 %v1330_v0, %v191_v28  ;;  %1074 = vst [vmem:[#allocation7 + $0x4b8] sm:$0xff] %v778_v34  ;;  %v782_v48 = vadd.f32 %v1335_v2, %v485_v35  ;;  %v783_v49 = vadd.f32 %v1335_v2, %v486_v36  ;;  %v213_v32 = vld [vmem:[#allocation4 + $0x5a0] sm:$0xff] }
  0x73   :  { %v784_v50 = vadd.f32 %v1335_v2, %v487_v37  ;;  %v489_v51 = vmul.f32 %v1330_v0, %v192_v33  ;;  %1075 = vst [vmem:[#allocation7 + $0x4c0] sm:$0xff] %v779_v41  ;;  %1076 = vst [vmem:[#allocation7 + $0x4c8] sm:$0xff] %v780_v42  ;;  %v490_v54 = vmul.f32 %v1330_v0, %v193_v38  ;;  %v214_v33 = vld [vmem:[#allocation4 + $0x5a8] sm:$0xff]  ;;  %v215_v38 = vld [vmem:[#allocation4 + $0x5b0] sm:$0xff] }
  0x74   :  { %1077 = vst [vmem:[#allocation7 + $0x4d0] sm:$0xff] %v781_v43  ;;  %v785_v53 = vadd.f32 %v1335_v2, %v488_v44  ;;  %v491_v55 = vmul.f32 %v1330_v0, %v194_v39  ;;  %v492_v56 = vmul.f32 %v1330_v0, %v195_v40  ;;  %1078 = vst [vmem:[#allocation7 + $0x4d8] sm:$0xff] %v782_v48  ;;  %v216_v43 = vld [vmem:[#allocation4 + $0x5b8] sm:$0xff]  ;;  %v217_v48 = vld [vmem:[#allocation4 + $0x5c0] sm:$0xff] }
  0x75   :  { %1079 = vst [vmem:[#allocation7 + $0x4e0] sm:$0xff] %v783_v49  ;;  %1080 = vst [vmem:[#allocation7 + $0x4e8] sm:$0xff] %v784_v50  ;;  %v786_v58 = vadd.f32 %v1335_v2, %v489_v51  ;;  %v493_v59 = vmul.f32 %v1330_v0, %v196_v45  ;;  %v494_v60 = vmul.f32 %v1330_v0, %v197_v46  ;;  %v218_v49 = vld [vmem:[#allocation4 + $0x5c8] sm:$0xff]  ;;  %v219_v50 = vld [vmem:[#allocation4 + $0x5d0] sm:$0xff] }
  0x76   :  { %v495_v61 = vmul.f32 %v1330_v0, %v198_v47  ;;  %1081 = vst [vmem:[#allocation7 + $0x4f0] sm:$0xff] %v785_v53  ;;  %v787_v3 = vadd.f32 %v1335_v2, %v490_v54  ;;  %v788_v4 = vadd.f32 %v1335_v2, %v491_v55  ;;  %v789_v5 = vadd.f32 %v1335_v2, %v492_v56  ;;  %v220_v55 = vld [vmem:[#allocation4 + $0x5d8] sm:$0xff]  ;;  %v221_v56 = vld [vmem:[#allocation4 + $0x5e0] sm:$0xff] }
  0x77   :  { %v496_v6 = vmul.f32 %v1330_v0, %v199_v52  ;;  %1082 = vst [vmem:[#allocation7 + $0x4f8] sm:$0xff] %v786_v58  ;;  %v790_v10 = vadd.f32 %v1335_v2, %v493_v59  ;;  %v791_v11 = vadd.f32 %v1335_v2, %v494_v60  ;;  %v497_v13 = vmul.f32 %v1330_v0, %v200_v57  ;;  %v222_v57 = vld [vmem:[#allocation4 + $0x5e8] sm:$0xff] }
  0x78   :  { %v792_v12 = vadd.f32 %v1335_v2, %v495_v61  ;;  %1083 = vst [vmem:[#allocation7 + $0x500] sm:$0xff] %v787_v3  ;;  %1084 = vst [vmem:[#allocation7 + $0x508] sm:$0xff] %v788_v4  ;;  %v498_v16 = vmul.f32 %v1330_v0, %v201_v62  ;;  %v499_v17 = vmul.f32 %v1330_v0, %v202_v63  ;;  %v223_v62 = vld [vmem:[#allocation4 + $0x5f0] sm:$0xff] }
  0x79   :  { %1085 = vst [vmem:[#allocation7 + $0x510] sm:$0xff] %v789_v5  ;;  %v793_v15 = vadd.f32 %v1335_v2, %v496_v6  ;;  %v500_v18 = vmul.f32 %v1330_v0, %v203_v1  ;;  %1086 = vst [vmem:[#allocation7 + $0x518] sm:$0xff] %v790_v10  ;;  %v794_v20 = vadd.f32 %v1335_v2, %v497_v13  ;;  %v224_v5 = vld [vmem:[#allocation4 + $0x5f8] sm:$0xff]  ;;  %v225_v10 = vld [vmem:[#allocation4 + $0x600] sm:$0xff] }
  0x7a   :  { %1087 = vst [vmem:[#allocation7 + $0x520] sm:$0xff] %v791_v11  ;;  %1088 = vst [vmem:[#allocation7 + $0x528] sm:$0xff] %v792_v12  ;;  %v501_v21 = vmul.f32 %v1330_v0, %v204_v7  ;;  %v502_v22 = vmul.f32 %v1330_v0, %v205_v8  ;;  %v503_v23 = vmul.f32 %v1330_v0, %v206_v9  ;;  %v226_v11 = vld [vmem:[#allocation4 + $0x608] sm:$0xff]  ;;  %v227_v12 = vld [vmem:[#allocation4 + $0x610] sm:$0xff] }
  0x7b   :  { %1089 = vst [vmem:[#allocation7 + $0x530] sm:$0xff] %v793_v15  ;;  %v795_v27 = vadd.f32 %v1335_v2, %v498_v16  ;;  %v796_v28 = vadd.f32 %v1335_v2, %v499_v17  ;;  %v797_v29 = vadd.f32 %v1335_v2, %v500_v18  ;;  %v504_v30 = vmul.f32 %v1330_v0, %v207_v14  ;;  %v228_v17 = vld [vmem:[#allocation4 + $0x618] sm:$0xff]  ;;  %v229_v18 = vld [vmem:[#allocation4 + $0x620] sm:$0xff] }
  0x7c   :  { %1090 = vst [vmem:[#allocation7 + $0x538] sm:$0xff] %v794_v20  ;;  %v798_v34 = vadd.f32 %v1335_v2, %v501_v21  ;;  %v799_v35 = vadd.f32 %v1335_v2, %v502_v22  ;;  %v800_v36 = vadd.f32 %v1335_v2, %v503_v23  ;;  %v505_v37 = vmul.f32 %v1330_v0, %v208_v19  ;;  %v230_v19 = vld [vmem:[#allocation4 + $0x628] sm:$0xff] }
  0x7d   :  { %1091 = vst [vmem:[#allocation7 + $0x540] sm:$0xff] %v795_v27  ;;  %1092 = vst [vmem:[#allocation7 + $0x548] sm:$0xff] %v796_v28  ;;  %v801_v39 = vadd.f32 %v1335_v2, %v504_v30  ;;  %v506_v40 = vmul.f32 %v1330_v0, %v209_v24  ;;  %v507_v41 = vmul.f32 %v1330_v0, %v210_v25  ;;  %v231_v24 = vld [vmem:[#allocation4 + $0x630] sm:$0xff] }
  0x7e   :  { %1093 = vst [vmem:[#allocation7 + $0x550] sm:$0xff] %v797_v29  ;;  %v508_v42 = vmul.f32 %v1330_v0, %v211_v26  ;;  %1094 = vst [vmem:[#allocation7 + $0x558] sm:$0xff] %v798_v34  ;;  %v802_v44 = vadd.f32 %v1335_v2, %v505_v37  ;;  %v509_v45 = vmul.f32 %v1330_v0, %v212_v31  ;;  %v232_v29 = vld [vmem:[#allocation4 + $0x638] sm:$0xff]  ;;  %v233_v34 = vld [vmem:[#allocation4 + $0x640] sm:$0xff] }
  0x7f   :  { %1095 = vst [vmem:[#allocation7 + $0x560] sm:$0xff] %v799_v35  ;;  %1096 = vst [vmem:[#allocation7 + $0x568] sm:$0xff] %v800_v36  ;;  %v510_v46 = vmul.f32 %v1330_v0, %v213_v32  ;;  %v511_v47 = vmul.f32 %v1330_v0, %v214_v33  ;;  %v803_v51 = vadd.f32 %v1335_v2, %v506_v40  ;;  %v234_v35 = vld [vmem:[#allocation4 + $0x648] sm:$0xff]  ;;  %v235_v36 = vld [vmem:[#allocation4 + $0x650] sm:$0xff] }
  0x80   :  { %1097 = vst [vmem:[#allocation7 + $0x570] sm:$0xff] %v801_v39  ;;  %v804_v52 = vadd.f32 %v1335_v2, %v507_v41  ;;  %v805_v53 = vadd.f32 %v1335_v2, %v508_v42  ;;  %v512_v54 = vmul.f32 %v1330_v0, %v215_v38  ;;  %1098 = vst [vmem:[#allocation7 + $0x578] sm:$0xff] %v802_v44  ;;  %v236_v41 = vld [vmem:[#allocation4 + $0x658] sm:$0xff]  ;;  %v237_v42 = vld [vmem:[#allocation4 + $0x660] sm:$0xff] }
  0x81   :  { %v806_v58 = vadd.f32 %v1335_v2, %v509_v45  ;;  %v807_v59 = vadd.f32 %v1335_v2, %v510_v46  ;;  %v808_v60 = vadd.f32 %v1335_v2, %v511_v47  ;;  %v513_v61 = vmul.f32 %v1330_v0, %v216_v43  ;;  %1099 = vst [vmem:[#allocation7 + $0x580] sm:$0xff] %v803_v51  ;;  %v238_v43 = vld [vmem:[#allocation4 + $0x668] sm:$0xff] }
  0x82   :  { %1100 = vst [vmem:[#allocation7 + $0x588] sm:$0xff] %v804_v52  ;;  %1101 = vst [vmem:[#allocation7 + $0x590] sm:$0xff] %v805_v53  ;;  %v809_v63 = vadd.f32 %v1335_v2, %v512_v54  ;;  %v514_v1 = vmul.f32 %v1330_v0, %v217_v48  ;;  %v515_v3 = vmul.f32 %v1330_v0, %v218_v49  ;;  %v239_v48 = vld [vmem:[#allocation4 + $0x670] sm:$0xff]  ;;  %v240_v53 = vld [vmem:[#allocation4 + $0x678] sm:$0xff] }
  0x83   :  { %v516_v4 = vmul.f32 %v1330_v0, %v219_v50  ;;  %1102 = vst [vmem:[#allocation7 + $0x598] sm:$0xff] %v806_v58  ;;  %1103 = vst [vmem:[#allocation7 + $0x5a0] sm:$0xff] %v807_v59  ;;  %v810_v6 = vadd.f32 %v1335_v2, %v513_v61  ;;  %v517_v7 = vmul.f32 %v1330_v0, %v220_v55  ;;  %v241_v58 = vld [vmem:[#allocation4 + $0x680] sm:$0xff]  ;;  %v242_v59 = vld [vmem:[#allocation4 + $0x688] sm:$0xff] }
  0x84   :  { %1104 = vst [vmem:[#allocation7 + $0x5a8] sm:$0xff] %v808_v60  ;;  %v518_v8 = vmul.f32 %v1330_v0, %v221_v56  ;;  %v519_v9 = vmul.f32 %v1330_v0, %v222_v57  ;;  %1105 = vst [vmem:[#allocation7 + $0x5b0] sm:$0xff] %v809_v63  ;;  %v811_v13 = vadd.f32 %v1335_v2, %v514_v1  ;;  %v243_v60 = vld [vmem:[#allocation4 + $0x690] sm:$0xff] }
  0x85   :  { %v812_v14 = vadd.f32 %v1335_v2, %v515_v3  ;;  %v813_v15 = vadd.f32 %v1335_v2, %v516_v4  ;;  %v520_v16 = vmul.f32 %v1330_v0, %v223_v62  ;;  %1106 = vst [vmem:[#allocation7 + $0x5b8] sm:$0xff] %v810_v6  ;;  %v814_v20 = vadd.f32 %v1335_v2, %v517_v7  ;;  %v244_v3 = vld [vmem:[#allocation4 + $0x698] sm:$0xff]  ;;  %v245_v4 = vld [vmem:[#allocation4 + $0x6a0] sm:$0xff] }
  0x86   :  { %v815_v21 = vadd.f32 %v1335_v2, %v518_v8  ;;  %v816_v22 = vadd.f32 %v1335_v2, %v519_v9  ;;  %v521_v23 = vmul.f32 %v1330_v0, %v224_v5  ;;  %1107 = vst [vmem:[#allocation7 + $0x5c0] sm:$0xff] %v811_v13  ;;  %v522_v26 = vmul.f32 %v1330_v0, %v225_v10  ;;  %v246_v5 = vld [vmem:[#allocation4 + $0x6a8] sm:$0xff]  ;;  %v247_v10 = vld [vmem:[#allocation4 + $0x6b0] sm:$0xff] }
  0x87   :  { %1108 = vst [vmem:[#allocation7 + $0x5c8] sm:$0xff] %v812_v14  ;;  %1109 = vst [vmem:[#allocation7 + $0x5d0] sm:$0xff] %v813_v15  ;;  %v817_v25 = vadd.f32 %v1335_v2, %v520_v16  ;;  %v523_v27 = vmul.f32 %v1330_v0, %v226_v11  ;;  %v524_v28 = vmul.f32 %v1330_v0, %v227_v12  ;;  %v248_v15 = vld [vmem:[#allocation4 + $0x6b8] sm:$0xff] }
  0x88   :  { %1110 = vst [vmem:[#allocation7 + $0x5d8] sm:$0xff] %v814_v20  ;;  %1111 = vst [vmem:[#allocation7 + $0x5e0] sm:$0xff] %v815_v21  ;;  %v818_v30 = vadd.f32 %v1335_v2, %v521_v23  ;;  %v525_v31 = vmul.f32 %v1330_v0, %v228_v17  ;;  %v526_v32 = vmul.f32 %v1330_v0, %v229_v18  ;;  %v249_v20 = vld [vmem:[#allocation4 + $0x6c0] sm:$0xff]  ;;  %v250_v21 = vld [vmem:[#allocation4 + $0x6c8] sm:$0xff] }
  0x89   :  { %1112 = vst [vmem:[#allocation7 + $0x5e8] sm:$0xff] %v816_v22  ;;  %v527_v33 = vmul.f32 %v1330_v0, %v230_v19  ;;  %1113 = vst [vmem:[#allocation7 + $0x5f0] sm:$0xff] %v817_v25  ;;  %v819_v37 = vadd.f32 %v1335_v2, %v522_v26  ;;  %v820_v38 = vadd.f32 %v1335_v2, %v523_v27  ;;  %v251_v22 = vld [vmem:[#allocation4 + $0x6d0] sm:$0xff]  ;;  %v252_v27 = vld [vmem:[#allocation4 + $0x6d8] sm:$0xff] }
  0x8a   :  { %v821_v39 = vadd.f32 %v1335_v2, %v524_v28  ;;  %v528_v40 = vmul.f32 %v1330_v0, %v231_v24  ;;  %1114 = vst [vmem:[#allocation7 + $0x5f8] sm:$0xff] %v818_v30  ;;  %v822_v44 = vadd.f32 %v1335_v2, %v525_v31  ;;  %v823_v45 = vadd.f32 %v1335_v2, %v526_v32  ;;  %v253_v28 = vld [vmem:[#allocation4 + $0x6e0] sm:$0xff] }
  0x8b   :  { %v824_v46 = vadd.f32 %v1335_v2, %v527_v33  ;;  %v529_v47 = vmul.f32 %v1330_v0, %v232_v29  ;;  %1115 = vst [vmem:[#allocation7 + $0x600] sm:$0xff] %v819_v37  ;;  %1116 = vst [vmem:[#allocation7 + $0x608] sm:$0xff] %v820_v38  ;;  %v530_v50 = vmul.f32 %v1330_v0, %v233_v34  ;;  %v254_v29 = vld [vmem:[#allocation4 + $0x6e8] sm:$0xff]  ;;  %v255_v34 = vld [vmem:[#allocation4 + $0x6f0] sm:$0xff] }
  0x8c   :  { %1117 = vst [vmem:[#allocation7 + $0x610] sm:$0xff] %v821_v39  ;;  %v825_v49 = vadd.f32 %v1335_v2, %v528_v40  ;;  %v531_v51 = vmul.f32 %v1330_v0, %v234_v35  ;;  %v532_v52 = vmul.f32 %v1330_v0, %v235_v36  ;;  %1118 = vst [vmem:[#allocation7 + $0x618] sm:$0xff] %v822_v44  ;;  %v256_v39 = vld [vmem:[#allocation4 + $0x6f8] sm:$0xff]  ;;  %v257_v44 = vld [vmem:[#allocation4 + $0x700] sm:$0xff] }
  0x8d   :  { %1119 = vst [vmem:[#allocation7 + $0x620] sm:$0xff] %v823_v45  ;;  %1120 = vst [vmem:[#allocation7 + $0x628] sm:$0xff] %v824_v46  ;;  %v826_v54 = vadd.f32 %v1335_v2, %v529_v47  ;;  %v533_v55 = vmul.f32 %v1330_v0, %v236_v41  ;;  %v534_v56 = vmul.f32 %v1330_v0, %v237_v42  ;;  %v258_v45 = vld [vmem:[#allocation4 + $0x708] sm:$0xff]  ;;  %v259_v46 = vld [vmem:[#allocation4 + $0x710] sm:$0xff] }
  0x8e   :  { %v535_v57 = vmul.f32 %v1330_v0, %v238_v43  ;;  %1121 = vst [vmem:[#allocation7 + $0x630] sm:$0xff] %v825_v49  ;;  %v827_v61 = vadd.f32 %v1335_v2, %v530_v50  ;;  %v828_v62 = vadd.f32 %v1335_v2, %v531_v51  ;;  %v829_v63 = vadd.f32 %v1335_v2, %v532_v52  ;;  %v260_v51 = vld [vmem:[#allocation4 + $0x718] sm:$0xff]  ;;  %v261_v52 = vld [vmem:[#allocation4 + $0x720] sm:$0xff] }
  0x8f   :  { %v536_v1 = vmul.f32 %v1330_v0, %v239_v48  ;;  %1122 = vst [vmem:[#allocation7 + $0x638] sm:$0xff] %v826_v54  ;;  %v830_v6 = vadd.f32 %v1335_v2, %v533_v55  ;;  %v831_v7 = vadd.f32 %v1335_v2, %v534_v56  ;;  %v537_v9 = vmul.f32 %v1330_v0, %v240_v53  ;;  %v262_v53 = vld [vmem:[#allocation4 + $0x728] sm:$0xff] }
  0x90   :  { %v832_v8 = vadd.f32 %v1335_v2, %v535_v57  ;;  %1123 = vst [vmem:[#allocation7 + $0x640] sm:$0xff] %v827_v61  ;;  %1124 = vst [vmem:[#allocation7 + $0x648] sm:$0xff] %v828_v62  ;;  %v538_v12 = vmul.f32 %v1330_v0, %v241_v58  ;;  %v539_v13 = vmul.f32 %v1330_v0, %v242_v59  ;;  %v263_v58 = vld [vmem:[#allocation4 + $0x730] sm:$0xff] }
  0x91   :  { %1125 = vst [vmem:[#allocation7 + $0x650] sm:$0xff] %v829_v63  ;;  %v833_v11 = vadd.f32 %v1335_v2, %v536_v1  ;;  %v540_v14 = vmul.f32 %v1330_v0, %v243_v60  ;;  %1126 = vst [vmem:[#allocation7 + $0x658] sm:$0xff] %v830_v6  ;;  %v834_v16 = vadd.f32 %v1335_v2, %v537_v9  ;;  %v264_v63 = vld [vmem:[#allocation4 + $0x738] sm:$0xff]  ;;  %v265_v6 = vld [vmem:[#allocation4 + $0x740] sm:$0xff] }
  0x92   :  { %1127 = vst [vmem:[#allocation7 + $0x660] sm:$0xff] %v831_v7  ;;  %1128 = vst [vmem:[#allocation7 + $0x668] sm:$0xff] %v832_v8  ;;  %v541_v17 = vmul.f32 %v1330_v0, %v244_v3  ;;  %v542_v18 = vmul.f32 %v1330_v0, %v245_v4  ;;  %v543_v19 = vmul.f32 %v1330_v0, %v246_v5  ;;  %v266_v7 = vld [vmem:[#allocation4 + $0x748] sm:$0xff]  ;;  %v267_v8 = vld [vmem:[#allocation4 + $0x750] sm:$0xff] }
  0x93   :  { %1129 = vst [vmem:[#allocation7 + $0x670] sm:$0xff] %v833_v11  ;;  %v835_v23 = vadd.f32 %v1335_v2, %v538_v12  ;;  %v836_v24 = vadd.f32 %v1335_v2, %v539_v13  ;;  %v837_v25 = vadd.f32 %v1335_v2, %v540_v14  ;;  %v544_v26 = vmul.f32 %v1330_v0, %v247_v10  ;;  %v268_v13 = vld [vmem:[#allocation4 + $0x758] sm:$0xff]  ;;  %v269_v14 = vld [vmem:[#allocation4 + $0x760] sm:$0xff] }
  0x94   :  { %1130 = vst [vmem:[#allocation7 + $0x678] sm:$0xff] %v834_v16  ;;  %v838_v30 = vadd.f32 %v1335_v2, %v541_v17  ;;  %v839_v31 = vadd.f32 %v1335_v2, %v542_v18  ;;  %v840_v32 = vadd.f32 %v1335_v2, %v543_v19  ;;  %v545_v33 = vmul.f32 %v1330_v0, %v248_v15  ;;  %v270_v15 = vld [vmem:[#allocation4 + $0x768] sm:$0xff] }
  0x95   :  { %1131 = vst [vmem:[#allocation7 + $0x680] sm:$0xff] %v835_v23  ;;  %1132 = vst [vmem:[#allocation7 + $0x688] sm:$0xff] %v836_v24  ;;  %v841_v35 = vadd.f32 %v1335_v2, %v544_v26  ;;  %v546_v36 = vmul.f32 %v1330_v0, %v249_v20  ;;  %v547_v37 = vmul.f32 %v1330_v0, %v250_v21  ;;  %v271_v20 = vld [vmem:[#allocation4 + $0x770] sm:$0xff] }
  0x96   :  { %1133 = vst [vmem:[#allocation7 + $0x690] sm:$0xff] %v837_v25  ;;  %v548_v38 = vmul.f32 %v1330_v0, %v251_v22  ;;  %1134 = vst [vmem:[#allocation7 + $0x698] sm:$0xff] %v838_v30  ;;  %v842_v40 = vadd.f32 %v1335_v2, %v545_v33  ;;  %v549_v41 = vmul.f32 %v1330_v0, %v252_v27  ;;  %v272_v25 = vld [vmem:[#allocation4 + $0x778] sm:$0xff]  ;;  %v273_v30 = vld [vmem:[#allocation4 + $0x780] sm:$0xff] }
  0x97   :  { %1135 = vst [vmem:[#allocation7 + $0x6a0] sm:$0xff] %v839_v31  ;;  %1136 = vst [vmem:[#allocation7 + $0x6a8] sm:$0xff] %v840_v32  ;;  %v550_v42 = vmul.f32 %v1330_v0, %v253_v28  ;;  %v551_v43 = vmul.f32 %v1330_v0, %v254_v29  ;;  %v843_v47 = vadd.f32 %v1335_v2, %v546_v36  ;;  %v274_v31 = vld [vmem:[#allocation4 + $0x788] sm:$0xff]  ;;  %v275_v32 = vld [vmem:[#allocation4 + $0x790] sm:$0xff] }
  0x98   :  { %1137 = vst [vmem:[#allocation7 + $0x6b0] sm:$0xff] %v841_v35  ;;  %v844_v48 = vadd.f32 %v1335_v2, %v547_v37  ;;  %v845_v49 = vadd.f32 %v1335_v2, %v548_v38  ;;  %v552_v50 = vmul.f32 %v1330_v0, %v255_v34  ;;  %1138 = vst [vmem:[#allocation7 + $0x6b8] sm:$0xff] %v842_v40  ;;  %v276_v37 = vld [vmem:[#allocation4 + $0x798] sm:$0xff]  ;;  %v277_v38 = vld [vmem:[#allocation4 + $0x7a0] sm:$0xff] }
  0x99   :  { %v846_v54 = vadd.f32 %v1335_v2, %v549_v41  ;;  %v847_v55 = vadd.f32 %v1335_v2, %v550_v42  ;;  %v848_v56 = vadd.f32 %v1335_v2, %v551_v43  ;;  %v553_v57 = vmul.f32 %v1330_v0, %v256_v39  ;;  %1139 = vst [vmem:[#allocation7 + $0x6c0] sm:$0xff] %v843_v47  ;;  %v278_v39 = vld [vmem:[#allocation4 + $0x7a8] sm:$0xff] }
  0x9a   :  { %1140 = vst [vmem:[#allocation7 + $0x6c8] sm:$0xff] %v844_v48  ;;  %1141 = vst [vmem:[#allocation7 + $0x6d0] sm:$0xff] %v845_v49  ;;  %v849_v59 = vadd.f32 %v1335_v2, %v552_v50  ;;  %v554_v60 = vmul.f32 %v1330_v0, %v257_v44  ;;  %v555_v61 = vmul.f32 %v1330_v0, %v258_v45  ;;  %v279_v44 = vld [vmem:[#allocation4 + $0x7b0] sm:$0xff]  ;;  %v280_v49 = vld [vmem:[#allocation4 + $0x7b8] sm:$0xff] }
  0x9b   :  { %v556_v62 = vmul.f32 %v1330_v0, %v259_v46  ;;  %1142 = vst [vmem:[#allocation7 + $0x6d8] sm:$0xff] %v846_v54  ;;  %1143 = vst [vmem:[#allocation7 + $0x6e0] sm:$0xff] %v847_v55  ;;  %v850_v1 = vadd.f32 %v1335_v2, %v553_v57  ;;  %v557_v3 = vmul.f32 %v1330_v0, %v260_v51  ;;  %v281_v54 = vld [vmem:[#allocation4 + $0x7c0] sm:$0xff]  ;;  %v282_v55 = vld [vmem:[#allocation4 + $0x7c8] sm:$0xff] }
  0x9c   :  { %1144 = vst [vmem:[#allocation7 + $0x6e8] sm:$0xff] %v848_v56  ;;  %v558_v4 = vmul.f32 %v1330_v0, %v261_v52  ;;  %v559_v5 = vmul.f32 %v1330_v0, %v262_v53  ;;  %1145 = vst [vmem:[#allocation7 + $0x6f0] sm:$0xff] %v849_v59  ;;  %v851_v9 = vadd.f32 %v1335_v2, %v554_v60  ;;  %v283_v56 = vld [vmem:[#allocation4 + $0x7d0] sm:$0xff] }
  0x9d   :  { %v852_v10 = vadd.f32 %v1335_v2, %v555_v61  ;;  %v853_v11 = vadd.f32 %v1335_v2, %v556_v62  ;;  %v560_v12 = vmul.f32 %v1330_v0, %v263_v58  ;;  %1146 = vst [vmem:[#allocation7 + $0x6f8] sm:$0xff] %v850_v1  ;;  %v854_v16 = vadd.f32 %v1335_v2, %v557_v3  ;;  %v284_v61 = vld [vmem:[#allocation4 + $0x7d8] sm:$0xff]  ;;  %v285_v62 = vld [vmem:[#allocation4 + $0x7e0] sm:$0xff] }
  0x9e   :  { %v855_v17 = vadd.f32 %v1335_v2, %v558_v4  ;;  %v856_v18 = vadd.f32 %v1335_v2, %v559_v5  ;;  %v561_v19 = vmul.f32 %v1330_v0, %v264_v63  ;;  %1147 = vst [vmem:[#allocation7 + $0x700] sm:$0xff] %v851_v9  ;;  %v562_v22 = vmul.f32 %v1330_v0, %v265_v6  ;;  %v286_v63 = vld [vmem:[#allocation4 + $0x7e8] sm:$0xff]  ;;  %v287_v6 = vld [vmem:[#allocation4 + $0x7f0] sm:$0xff] }
  0x9f   :  { %1148 = vst [vmem:[#allocation7 + $0x708] sm:$0xff] %v852_v10  ;;  %1149 = vst [vmem:[#allocation7 + $0x710] sm:$0xff] %v853_v11  ;;  %v857_v21 = vadd.f32 %v1335_v2, %v560_v12  ;;  %v563_v23 = vmul.f32 %v1330_v0, %v266_v7  ;;  %v564_v24 = vmul.f32 %v1330_v0, %v267_v8  ;;  %v288_v11 = vld [vmem:[#allocation4 + $0x7f8] sm:$0xff] }
  0xa0   :  { %1150 = vst [vmem:[#allocation7 + $0x718] sm:$0xff] %v854_v16  ;;  %1151 = vst [vmem:[#allocation7 + $0x720] sm:$0xff] %v855_v17  ;;  %v858_v26 = vadd.f32 %v1335_v2, %v561_v19  ;;  %v565_v27 = vmul.f32 %v1330_v0, %v268_v13  ;;  %v566_v28 = vmul.f32 %v1330_v0, %v269_v14  ;;  %v289_v16 = vld [vmem:[#allocation4 + $0x800] sm:$0xff]  ;;  %v290_v17 = vld [vmem:[#allocation4 + $0x808] sm:$0xff] }
  0xa1   :  { %1152 = vst [vmem:[#allocation7 + $0x728] sm:$0xff] %v856_v18  ;;  %v567_v29 = vmul.f32 %v1330_v0, %v270_v15  ;;  %1153 = vst [vmem:[#allocation7 + $0x730] sm:$0xff] %v857_v21  ;;  %v859_v33 = vadd.f32 %v1335_v2, %v562_v22  ;;  %v860_v34 = vadd.f32 %v1335_v2, %v563_v23  ;;  %v291_v18 = vld [vmem:[#allocation4 + $0x810] sm:$0xff]  ;;  %v292_v23 = vld [vmem:[#allocation4 + $0x818] sm:$0xff] }
  0xa2   :  { %v861_v35 = vadd.f32 %v1335_v2, %v564_v24  ;;  %v568_v36 = vmul.f32 %v1330_v0, %v271_v20  ;;  %1154 = vst [vmem:[#allocation7 + $0x738] sm:$0xff] %v858_v26  ;;  %v862_v40 = vadd.f32 %v1335_v2, %v565_v27  ;;  %v863_v41 = vadd.f32 %v1335_v2, %v566_v28  ;;  %v293_v24 = vld [vmem:[#allocation4 + $0x820] sm:$0xff] }
  0xa3   :  { %v864_v42 = vadd.f32 %v1335_v2, %v567_v29  ;;  %v569_v43 = vmul.f32 %v1330_v0, %v272_v25  ;;  %1155 = vst [vmem:[#allocation7 + $0x740] sm:$0xff] %v859_v33  ;;  %1156 = vst [vmem:[#allocation7 + $0x748] sm:$0xff] %v860_v34  ;;  %v570_v46 = vmul.f32 %v1330_v0, %v273_v30  ;;  %v294_v25 = vld [vmem:[#allocation4 + $0x828] sm:$0xff]  ;;  %v295_v30 = vld [vmem:[#allocation4 + $0x830] sm:$0xff] }
  0xa4   :  { %1157 = vst [vmem:[#allocation7 + $0x750] sm:$0xff] %v861_v35  ;;  %v865_v45 = vadd.f32 %v1335_v2, %v568_v36  ;;  %v571_v47 = vmul.f32 %v1330_v0, %v274_v31  ;;  %v572_v48 = vmul.f32 %v1330_v0, %v275_v32  ;;  %1158 = vst [vmem:[#allocation7 + $0x758] sm:$0xff] %v862_v40  ;;  %v296_v35 = vld [vmem:[#allocation4 + $0x838] sm:$0xff]  ;;  %v297_v40 = vld [vmem:[#allocation4 + $0x840] sm:$0xff] }
  0xa5   :  { %1159 = vst [vmem:[#allocation7 + $0x760] sm:$0xff] %v863_v41  ;;  %1160 = vst [vmem:[#allocation7 + $0x768] sm:$0xff] %v864_v42  ;;  %v866_v50 = vadd.f32 %v1335_v2, %v569_v43  ;;  %v573_v51 = vmul.f32 %v1330_v0, %v276_v37  ;;  %v574_v52 = vmul.f32 %v1330_v0, %v277_v38  ;;  %v298_v41 = vld [vmem:[#allocation4 + $0x848] sm:$0xff]  ;;  %v299_v42 = vld [vmem:[#allocation4 + $0x850] sm:$0xff] }
  0xa6   :  { %v575_v53 = vmul.f32 %v1330_v0, %v278_v39  ;;  %1161 = vst [vmem:[#allocation7 + $0x770] sm:$0xff] %v865_v45  ;;  %v867_v57 = vadd.f32 %v1335_v2, %v570_v46  ;;  %v868_v58 = vadd.f32 %v1335_v2, %v571_v47  ;;  %v869_v59 = vadd.f32 %v1335_v2, %v572_v48  ;;  %v300_v47 = vld [vmem:[#allocation4 + $0x858] sm:$0xff]  ;;  %v301_v48 = vld [vmem:[#allocation4 + $0x860] sm:$0xff] }
  0xa7   :  { %v576_v60 = vmul.f32 %v1330_v0, %v279_v44  ;;  %1162 = vst [vmem:[#allocation7 + $0x778] sm:$0xff] %v866_v50  ;;  %v870_v1 = vadd.f32 %v1335_v2, %v573_v51  ;;  %v871_v3 = vadd.f32 %v1335_v2, %v574_v52  ;;  %v577_v5 = vmul.f32 %v1330_v0, %v280_v49  ;;  %v302_v49 = vld [vmem:[#allocation4 + $0x868] sm:$0xff] }
  0xa8   :  { %v872_v4 = vadd.f32 %v1335_v2, %v575_v53  ;;  %1163 = vst [vmem:[#allocation7 + $0x780] sm:$0xff] %v867_v57  ;;  %1164 = vst [vmem:[#allocation7 + $0x788] sm:$0xff] %v868_v58  ;;  %v578_v8 = vmul.f32 %v1330_v0, %v281_v54  ;;  %v579_v9 = vmul.f32 %v1330_v0, %v282_v55  ;;  %v303_v54 = vld [vmem:[#allocation4 + $0x870] sm:$0xff] }
  0xa9   :  { %1165 = vst [vmem:[#allocation7 + $0x790] sm:$0xff] %v869_v59  ;;  %v873_v7 = vadd.f32 %v1335_v2, %v576_v60  ;;  %v580_v10 = vmul.f32 %v1330_v0, %v283_v56  ;;  %1166 = vst [vmem:[#allocation7 + $0x798] sm:$0xff] %v870_v1  ;;  %v874_v12 = vadd.f32 %v1335_v2, %v577_v5  ;;  %v304_v59 = vld [vmem:[#allocation4 + $0x878] sm:$0xff]  ;;  %v305_v1 = vld [vmem:[#allocation4 + $0x880] sm:$0xff] }
  0xaa   :  { %1167 = vst [vmem:[#allocation7 + $0x7a0] sm:$0xff] %v871_v3  ;;  %1168 = vst [vmem:[#allocation7 + $0x7a8] sm:$0xff] %v872_v4  ;;  %v581_v13 = vmul.f32 %v1330_v0, %v284_v61  ;;  %v582_v14 = vmul.f32 %v1330_v0, %v285_v62  ;;  %v583_v15 = vmul.f32 %v1330_v0, %v286_v63  ;;  %v306_v3 = vld [vmem:[#allocation4 + $0x888] sm:$0xff]  ;;  %v307_v4 = vld [vmem:[#allocation4 + $0x890] sm:$0xff] }
  0xab   :  { %1169 = vst [vmem:[#allocation7 + $0x7b0] sm:$0xff] %v873_v7  ;;  %v875_v19 = vadd.f32 %v1335_v2, %v578_v8  ;;  %v876_v20 = vadd.f32 %v1335_v2, %v579_v9  ;;  %v877_v21 = vadd.f32 %v1335_v2, %v580_v10  ;;  %v584_v22 = vmul.f32 %v1330_v0, %v287_v6  ;;  %v308_v9 = vld [vmem:[#allocation4 + $0x898] sm:$0xff]  ;;  %v309_v10 = vld [vmem:[#allocation4 + $0x8a0] sm:$0xff] }
  0xac   :  { %1170 = vst [vmem:[#allocation7 + $0x7b8] sm:$0xff] %v874_v12  ;;  %v878_v26 = vadd.f32 %v1335_v2, %v581_v13  ;;  %v879_v27 = vadd.f32 %v1335_v2, %v582_v14  ;;  %v880_v28 = vadd.f32 %v1335_v2, %v583_v15  ;;  %v585_v29 = vmul.f32 %v1330_v0, %v288_v11  ;;  %v310_v11 = vld [vmem:[#allocation4 + $0x8a8] sm:$0xff] }
  0xad   :  { %1171 = vst [vmem:[#allocation7 + $0x7c0] sm:$0xff] %v875_v19  ;;  %1172 = vst [vmem:[#allocation7 + $0x7c8] sm:$0xff] %v876_v20  ;;  %v881_v31 = vadd.f32 %v1335_v2, %v584_v22  ;;  %v586_v32 = vmul.f32 %v1330_v0, %v289_v16  ;;  %v587_v33 = vmul.f32 %v1330_v0, %v290_v17  ;;  %v311_v16 = vld [vmem:[#allocation4 + $0x8b0] sm:$0xff] }
  0xae   :  { %1173 = vst [vmem:[#allocation7 + $0x7d0] sm:$0xff] %v877_v21  ;;  %v588_v34 = vmul.f32 %v1330_v0, %v291_v18  ;;  %1174 = vst [vmem:[#allocation7 + $0x7d8] sm:$0xff] %v878_v26  ;;  %v882_v36 = vadd.f32 %v1335_v2, %v585_v29  ;;  %v589_v37 = vmul.f32 %v1330_v0, %v292_v23  ;;  %v312_v21 = vld [vmem:[#allocation4 + $0x8b8] sm:$0xff]  ;;  %v313_v26 = vld [vmem:[#allocation4 + $0x8c0] sm:$0xff] }
  0xaf   :  { %1175 = vst [vmem:[#allocation7 + $0x7e0] sm:$0xff] %v879_v27  ;;  %1176 = vst [vmem:[#allocation7 + $0x7e8] sm:$0xff] %v880_v28  ;;  %v590_v38 = vmul.f32 %v1330_v0, %v293_v24  ;;  %v591_v39 = vmul.f32 %v1330_v0, %v294_v25  ;;  %v883_v43 = vadd.f32 %v1335_v2, %v586_v32  ;;  %v314_v27 = vld [vmem:[#allocation4 + $0x8c8] sm:$0xff]  ;;  %v315_v28 = vld [vmem:[#allocation4 + $0x8d0] sm:$0xff] }
  0xb0   :  { %1177 = vst [vmem:[#allocation7 + $0x7f0] sm:$0xff] %v881_v31  ;;  %v884_v44 = vadd.f32 %v1335_v2, %v587_v33  ;;  %v885_v45 = vadd.f32 %v1335_v2, %v588_v34  ;;  %v592_v46 = vmul.f32 %v1330_v0, %v295_v30  ;;  %1178 = vst [vmem:[#allocation7 + $0x7f8] sm:$0xff] %v882_v36  ;;  %v316_v33 = vld [vmem:[#allocation4 + $0x8d8] sm:$0xff]  ;;  %v317_v34 = vld [vmem:[#allocation4 + $0x8e0] sm:$0xff] }
  0xb1   :  { %v886_v50 = vadd.f32 %v1335_v2, %v589_v37  ;;  %v887_v51 = vadd.f32 %v1335_v2, %v590_v38  ;;  %v888_v52 = vadd.f32 %v1335_v2, %v591_v39  ;;  %v593_v53 = vmul.f32 %v1330_v0, %v296_v35  ;;  %1179 = vst [vmem:[#allocation7 + $0x800] sm:$0xff] %v883_v43  ;;  %v318_v35 = vld [vmem:[#allocation4 + $0x8e8] sm:$0xff] }
  0xb2   :  { %1180 = vst [vmem:[#allocation7 + $0x808] sm:$0xff] %v884_v44  ;;  %1181 = vst [vmem:[#allocation7 + $0x810] sm:$0xff] %v885_v45  ;;  %v889_v55 = vadd.f32 %v1335_v2, %v592_v46  ;;  %v594_v56 = vmul.f32 %v1330_v0, %v297_v40  ;;  %v595_v57 = vmul.f32 %v1330_v0, %v298_v41  ;;  %v319_v40 = vld [vmem:[#allocation4 + $0x8f0] sm:$0xff]  ;;  %v320_v45 = vld [vmem:[#allocation4 + $0x8f8] sm:$0xff] }
  0xb3   :  { %v596_v58 = vmul.f32 %v1330_v0, %v299_v42  ;;  %1182 = vst [vmem:[#allocation7 + $0x818] sm:$0xff] %v886_v50  ;;  %1183 = vst [vmem:[#allocation7 + $0x820] sm:$0xff] %v887_v51  ;;  %v890_v60 = vadd.f32 %v1335_v2, %v593_v53  ;;  %v597_v61 = vmul.f32 %v1330_v0, %v300_v47  ;;  %v321_v50 = vld [vmem:[#allocation4 + $0x900] sm:$0x1f]  ;;  %v322_v51 = vld [vmem:[#allocation4 + $0x908] sm:$0x1f] }
  0xb4   :  { %1184 = vst [vmem:[#allocation7 + $0x828] sm:$0xff] %v888_v52  ;;  %v598_v62 = vmul.f32 %v1330_v0, %v301_v48  ;;  %v599_v63 = vmul.f32 %v1330_v0, %v302_v49  ;;  %1185 = vst [vmem:[#allocation7 + $0x830] sm:$0xff] %v889_v55  ;;  %v891_v5 = vadd.f32 %v1335_v2, %v594_v56  ;;  %v323_v52 = vld [vmem:[#allocation4 + $0x910] sm:$0x1f] }
  0xb5   :  { %v892_v6 = vadd.f32 %v1335_v2, %v595_v57  ;;  %v893_v7 = vadd.f32 %v1335_v2, %v596_v58  ;;  %v600_v8 = vmul.f32 %v1330_v0, %v303_v54  ;;  %1186 = vst [vmem:[#allocation7 + $0x838] sm:$0xff] %v890_v60  ;;  %v894_v12 = vadd.f32 %v1335_v2, %v597_v61  ;;  %v324_v57 = vld [vmem:[#allocation4 + $0x918] sm:$0x1f]  ;;  %v325_v58 = vld [vmem:[#allocation4 + $0x920] sm:$0x1f] }
  0xb6   :  { %v895_v13 = vadd.f32 %v1335_v2, %v598_v62  ;;  %v896_v14 = vadd.f32 %v1335_v2, %v599_v63  ;;  %v601_v15 = vmul.f32 %v1330_v0, %v304_v59  ;;  %1187 = vst [vmem:[#allocation7 + $0x840] sm:$0xff] %v891_v5  ;;  %v602_v18 = vmul.f32 %v1330_v0, %v305_v1  ;;  %v326_v59 = vld [vmem:[#allocation4 + $0x928] sm:$0x1f]  ;;  %v327_v1 = vld [vmem:[#allocation4 + $0x930] sm:$0x1f] }
  0xb7   :  { %1188 = vst [vmem:[#allocation7 + $0x848] sm:$0xff] %v892_v6  ;;  %1189 = vst [vmem:[#allocation7 + $0x850] sm:$0xff] %v893_v7  ;;  %v897_v17 = vadd.f32 %v1335_v2, %v600_v8  ;;  %v603_v19 = vmul.f32 %v1330_v0, %v306_v3  ;;  %v604_v20 = vmul.f32 %v1330_v0, %v307_v4  ;;  %v328_v7 = vld [vmem:[#allocation4 + $0x938] sm:$0x1f] }
  0xb8   :  { %1190 = vst [vmem:[#allocation7 + $0x858] sm:$0xff] %v894_v12  ;;  %1191 = vst [vmem:[#allocation7 + $0x860] sm:$0xff] %v895_v13  ;;  %v898_v22 = vadd.f32 %v1335_v2, %v601_v15  ;;  %v605_v23 = vmul.f32 %v1330_v0, %v308_v9  ;;  %v606_v24 = vmul.f32 %v1330_v0, %v309_v10 }
  0xb9   :  { %1192 = vst [vmem:[#allocation7 + $0x868] sm:$0xff] %v896_v14  ;;  %v607_v25 = vmul.f32 %v1330_v0, %v310_v11  ;;  %1193 = vst [vmem:[#allocation7 + $0x870] sm:$0xff] %v897_v17  ;;  %v899_v29 = vadd.f32 %v1335_v2, %v602_v18  ;;  %v900_v30 = vadd.f32 %v1335_v2, %v603_v19 }
  0xba   :  { %v901_v31 = vadd.f32 %v1335_v2, %v604_v20  ;;  %v608_v32 = vmul.f32 %v1330_v0, %v311_v16  ;;  %1194 = vst [vmem:[#allocation7 + $0x878] sm:$0xff] %v898_v22  ;;  %v902_v36 = vadd.f32 %v1335_v2, %v605_v23  ;;  %v903_v37 = vadd.f32 %v1335_v2, %v606_v24 }
  0xbb   :  { %v904_v38 = vadd.f32 %v1335_v2, %v607_v25  ;;  %v609_v39 = vmul.f32 %v1330_v0, %v312_v21  ;;  %1195 = vst [vmem:[#allocation7 + $0x880] sm:$0xff] %v899_v29  ;;  %1196 = vst [vmem:[#allocation7 + $0x888] sm:$0xff] %v900_v30  ;;  %v610_v42 = vmul.f32 %v1330_v0, %v313_v26 }
  0xbc   :  { %1197 = vst [vmem:[#allocation7 + $0x890] sm:$0xff] %v901_v31  ;;  %v905_v41 = vadd.f32 %v1335_v2, %v608_v32  ;;  %v611_v43 = vmul.f32 %v1330_v0, %v314_v27  ;;  %v612_v44 = vmul.f32 %v1330_v0, %v315_v28  ;;  %1198 = vst [vmem:[#allocation7 + $0x898] sm:$0xff] %v902_v36 }
  0xbd   :  { %1199 = vst [vmem:[#allocation7 + $0x8a0] sm:$0xff] %v903_v37  ;;  %1200 = vst [vmem:[#allocation7 + $0x8a8] sm:$0xff] %v904_v38  ;;  %v906_v46 = vadd.f32 %v1335_v2, %v609_v39  ;;  %v613_v47 = vmul.f32 %v1330_v0, %v316_v33  ;;  %v614_v48 = vmul.f32 %v1330_v0, %v317_v34 }
  0xbe   :  { %v615_v49 = vmul.f32 %v1330_v0, %v318_v35  ;;  %1201 = vst [vmem:[#allocation7 + $0x8b0] sm:$0xff] %v905_v41  ;;  %v907_v53 = vadd.f32 %v1335_v2, %v610_v42  ;;  %v908_v54 = vadd.f32 %v1335_v2, %v611_v43  ;;  %v909_v55 = vadd.f32 %v1335_v2, %v612_v44 }
  0xbf   :  { %v616_v56 = vmul.f32 %v1330_v0, %v319_v40  ;;  %1202 = vst [vmem:[#allocation7 + $0x8b8] sm:$0xff] %v906_v46  ;;  %v910_v60 = vadd.f32 %v1335_v2, %v613_v47  ;;  %v911_v61 = vadd.f32 %v1335_v2, %v614_v48  ;;  %v617_v63 = vmul.f32 %v1330_v0, %v320_v45 }
  0xc0   :  { %v912_v62 = vadd.f32 %v1335_v2, %v615_v49  ;;  %1203 = vst [vmem:[#allocation7 + $0x8c0] sm:$0xff] %v907_v53  ;;  %1204 = vst [vmem:[#allocation7 + $0x8c8] sm:$0xff] %v908_v54  ;;  %v618_v4 = vmul.f32 %v1330_v0, %v321_v50  ;;  %v619_v5 = vmul.f32 %v1330_v0, %v322_v51 }
  0xc1   :  { %1205 = vst [vmem:[#allocation7 + $0x8d0] sm:$0xff] %v909_v55  ;;  %v913_v3 = vadd.f32 %v1335_v2, %v616_v56  ;;  %v620_v6 = vmul.f32 %v1330_v0, %v323_v52  ;;  %1206 = vst [vmem:[#allocation7 + $0x8d8] sm:$0xff] %v910_v60  ;;  %v914_v8 = vadd.f32 %v1335_v2, %v617_v63 }
  0xc2   :  { %1207 = vst [vmem:[#allocation7 + $0x8e0] sm:$0xff] %v911_v61  ;;  %1208 = vst [vmem:[#allocation7 + $0x8e8] sm:$0xff] %v912_v62  ;;  %v621_v9 = vmul.f32 %v1330_v0, %v324_v57  ;;  %v622_v10 = vmul.f32 %v1330_v0, %v325_v58  ;;  %v623_v11 = vmul.f32 %v1330_v0, %v326_v59 }
  0xc3   :  { %1209 = vst [vmem:[#allocation7 + $0x8f0] sm:$0xff] %v913_v3  ;;  %v915_v12 = vadd.f32 %v1335_v2, %v618_v4  ;;  %v916_v13 = vadd.f32 %v1335_v2, %v619_v5  ;;  %v917_v14 = vadd.f32 %v1335_v2, %v620_v6  ;;  %v624_v15 = vmul.f32 %v1330_v0, %v327_v1 }
  0xc4   :  { %1210 = vst [vmem:[#allocation7 + $0x8f8] sm:$0xff] %v914_v8  ;;  %v918_v16 = vadd.f32 %v1335_v2, %v621_v9  ;;  %v919_v17 = vadd.f32 %v1335_v2, %v622_v10  ;;  %v920_v18 = vadd.f32 %v1335_v2, %v623_v11  ;;  %v625_v19 = vmul.f32 %v1330_v0, %v328_v7 }
  0xc5   :  { %1211 = vst [vmem:[#allocation7 + $0x900] sm:$0x1f] %v915_v12  ;;  %1212 = vst [vmem:[#allocation7 + $0x908] sm:$0x1f] %v916_v13  ;;  %v921_v20 = vadd.f32 %v1335_v2, %v624_v15 }
  0xc6   :  { %1213 = vst [vmem:[#allocation7 + $0x910] sm:$0x1f] %v917_v14  ;;  %1214 = vst [vmem:[#allocation7 + $0x918] sm:$0x1f] %v918_v16  ;;  %v922_v21 = vadd.f32 %v1335_v2, %v625_v19 }
  0xc7   :  { %1215 = vst [vmem:[#allocation7 + $0x920] sm:$0x1f] %v919_v17  ;;  %1216 = vst [vmem:[#allocation7 + $0x928] sm:$0x1f] %v920_v18 }
  0xc8   :  { %1217 = vst [vmem:[#allocation7 + $0x930] sm:$0x1f] %v921_v20  ;;  %1218 = vst [vmem:[#allocation7 + $0x938] sm:$0x1f] %v922_v21 }
  0xc9   :  { %1273 = shalt.err (!%p1270_p12)
}
  0xca   :  { %s1274_s5 = scalar_lea.hbm %s1947_s3, 37888 }
  0xcb   :  { %p1275_p13 = scmp.ne.s32.totalorder %s1947_s3, %s1274_s5  ;;  %p1278_p0 = scmp.lt.u32.totalorder %s1274_s5, %s1947_s3 }
  0xcd   :  { %p1280_p1 = pnand %p1278_p0, %p1275_p13 }
  0xcf   :  { %1283 = shalt.err (!%p1280_p1)
}
  0xd0   :  { %1230 = dma.vmem_to_hbm [thread:$0]  %s1225_s1, 37888, %s1947_s3, [#allocation6], %s1289_s22, %s1289_s22, %s1290_s23  }
  0xd1   :  { %1286 = dma.done.wait [#allocation6], 37888  }
  0xd2   :  { %1287 = vsyncadd [#allocation6], 4294929408 }
  0xd3   :  { %1234 = vsyncpa [#allocation5], 1 }
  0xd4   :  { %1235 = vsyncpa [#allocation6], 1 }

</bundles_post_ra>
